<compile_context>
chip_gen: v5e
topology: v5e:2x2
jax: 0.10.0
libtpu: 0.0.40
codegen_flags: <defaults>
</compile_context>

<pallas_src>
import functools

import jax
import jax.numpy as jnp
from jax.experimental import pallas as pl
from jax.experimental.pallas import tpu as pltpu

HIDDEN = 128
HEADS = 4
HEAD_DIM = HIDDEN // HEADS
FFN = 256
VOCAB = 64
MAX_POS = 16
LN_EPS = 1e-12


# ----------------------------- fused Pallas kernel -----------------------------

def _encoder_kernel(
    emb_ref, mask_ref,
    emb_g_ref, emb_b_ref,
    w_qkvt_ref, b_qkvt_ref,
    w_o3_ref, b_o_ref,
    attn_g_ref, attn_b_ref,
    w_ffn1_ref, b_ffn1_ref,
    w_ffn2_ref, b_ffn2_ref,
    ffn_g_ref, ffn_b_ref,
    w_pool_ref, b_pool_ref,
    w_out_ref, b_out_ref,
    o_ref,
    *, seq,
):
  f32 = jnp.float32
  bf16 = jnp.bfloat16

  def layernorm(h, g_ref, b_ref):
    # Single-pass LN: sum and sum-of-squares from one read of h.
    s1 = jnp.sum(h, axis=-1, keepdims=True)
    s2 = jnp.sum(h * h, axis=-1, keepdims=True)
    mu = s1 * (1.0 / HIDDEN)
    var = s2 * (1.0 / HIDDEN) - mu * mu
    return (h - mu) * jax.lax.rsqrt(var + LN_EPS) * g_ref[...] + b_ref[...]

  def matmul(x, w_ref, b_ref):
    # x: f32 activation; w_ref: bf16 weight already in [in, out] layout.
    return jnp.dot(x.astype(bf16), w_ref[...], preferred_element_type=f32) + b_ref[...]

  # --- embedding LayerNorm (this grid step = one batch element) ---
  x = layernorm(emb_ref[...], emb_g_ref, emb_b_ref)               # (S, H) f32

  # --- fused QKV projection, transposed orientation: (3H, H_in) . (S, H_in)^T.
  # Heads land on the MAJOR (sublane) axis, so all head handling below is
  # 8-aligned major-dim slicing: no sub-128 lane slices, no lane concats.
  qkvt = jax.lax.dot_general(
      w_qkvt_ref[...], x.astype(bf16),
      (((1,), (1,)), ((), ())), preferred_element_type=f32)        # (3H, S)
  qkvt = qkvt + b_qkvt_ref[...]                                    # (3H, 1) bias
  qkvt_bf = qkvt.astype(bf16)                                      # single cast

  # K, V come out pre-shaped as (head, head_dim, key) with zero relayout.
  k3 = qkvt_bf[HIDDEN:2 * HIDDEN, :].reshape(HEADS, HEAD_DIM, seq)
  v3 = qkvt_bf[2 * HIDDEN:3 * HIDDEN, :].reshape(HEADS, HEAD_DIM, seq)
  # Q needs (head, query, head_dim): 4 tiny 2D transposes + one major-axis stack.
  q3 = jnp.stack(
      [qkvt[h * HEAD_DIM:(h + 1) * HEAD_DIM, :].T for h in range(HEADS)],
      axis=0).astype(bf16)                                         # (Hn, S, Dh)

  # --- attention: one batched scores matmul + one batched PV matmul ---
  scale = 1.0 / (HEAD_DIM ** 0.5)
  s3 = jax.lax.dot_general(
      q3, k3, (((2,), (1,)), ((0,), (0,))),
      preferred_element_type=f32)                                  # (Hn, S, S)
  s3 = s3 * scale + mask_ref[...]                                  # (1, 1, S) key bias
  mx = jnp.max(s3, axis=-1, keepdims=True)
  p = jnp.exp(s3 - mx)
  # Note: a fully-masked row yields a uniform distribution (intentional).
  p = p * pl.reciprocal(jnp.sum(p, axis=-1, keepdims=True), approx=True)
  ctx3 = jax.lax.dot_general(
      p.astype(bf16), v3, (((2,), (2,)), ((0,), (0,))),
      preferred_element_type=f32)                                  # (Hn, S, Dh)

  # --- output projection with the head re-concat folded into the weight layout:
  # batched (S, Dh) x (Dh, H) per head, then a cheap sum over the head axis.
  proj = jax.lax.dot_general(
      ctx3.astype(bf16), w_o3_ref[...], (((2,), (1,)), ((0,), (0,))),
      preferred_element_type=f32)                                  # (Hn, S, H)
  attn = proj[0]
  for h in range(1, HEADS):
    attn = attn + proj[h]
  attn = attn + b_o_ref[...]

  x = layernorm(attn + x, attn_g_ref, attn_b_ref)

  # --- feed-forward block + residual + LN ---
  # TODO(synk): HF BERT uses exact erf GELU; tanh-approx GELU is used here.
  h1 = jax.nn.gelu(matmul(x, w_ffn1_ref, b_ffn1_ref))
  h2 = matmul(h1, w_ffn2_ref, b_ffn2_ref)
  x = layernorm(h2 + x, ffn_g_ref, ffn_b_ref)

  # --- pooler on the CLS row (row 0 of this batch block) + fc_out head ---
  cls = x[0:1, :]                                                  # (1, H)
  pooled = jnp.tanh(matmul(cls, w_pool_ref, b_pool_ref))           # (1, H) f32
  # Linear(H, 1) as a lane reduction instead of an Nx1 MXU matmul.
  out = jnp.sum(pooled * w_out_ref[...], axis=-1, keepdims=True) + b_out_ref[...]
  o_ref[...] = out.reshape(1, 1, 1).astype(o_ref.dtype)


# --------------------------- parameters / forward ---------------------------

def init_params(key):
  def nrm(k, shape):
    return jax.random.normal(k, shape, jnp.float32) * 0.02

  ks = jax.random.split(key, 10)
  return {
      "word_emb": nrm(ks[0], (VOCAB, HIDDEN)),
      "pos_emb": nrm(ks[1], (MAX_POS, HIDDEN)),
      "emb_ln_g": jnp.ones((HIDDEN,), jnp.float32),
      "emb_ln_b": jnp.zeros((HIDDEN,), jnp.float32),
      "wq": nrm(ks[2], (HIDDEN, HIDDEN)), "bq": jnp.zeros((HIDDEN,), jnp.float32),
      "wk": nrm(ks[3], (HIDDEN, HIDDEN)), "bk": jnp.zeros((HIDDEN,), jnp.float32),
      "wv": nrm(ks[4], (HIDDEN, HIDDEN)), "bv": jnp.zeros((HIDDEN,), jnp.float32),
      "wo": nrm(ks[5], (HIDDEN, HIDDEN)), "bo": jnp.zeros((HIDDEN,), jnp.float32),
      "attn_ln_g": jnp.ones((HIDDEN,), jnp.float32),
      "attn_ln_b": jnp.zeros((HIDDEN,), jnp.float32),
      "w_ffn1": nrm(ks[6], (FFN, HIDDEN)), "b_ffn1": jnp.zeros((FFN,), jnp.float32),
      "w_ffn2": nrm(ks[7], (HIDDEN, FFN)), "b_ffn2": jnp.zeros((HIDDEN,), jnp.float32),
      "ffn_ln_g": jnp.ones((HIDDEN,), jnp.float32),
      "ffn_ln_b": jnp.zeros((HIDDEN,), jnp.float32),
      "w_pool": nrm(ks[8], (HIDDEN, HIDDEN)),
      "b_pool": jnp.zeros((HIDDEN,), jnp.float32),
      "w_out": nrm(ks[9], (1, HIDDEN)),          # fc_out = Linear(hidden, 1)
      "b_out": jnp.zeros((1,), jnp.float32),
  }


def net_forward(params, input_ids, attention_mask):
  bsz, seq = input_ids.shape
  bf16 = jnp.bfloat16

  # Embedding gather (data-dependent) stays in plain XLA.
  emb = jnp.take(params["word_emb"], input_ids, axis=0) + params["pos_emb"][:seq][None]
  emb = emb.reshape(bsz * seq, HIDDEN).astype(jnp.float32)
  mask_bias = ((1.0 - attention_mask.astype(jnp.float32)) * -1e9).reshape(bsz, 1, seq)

  # torch [out, in] layouts -> MXU-friendly layouts, done ONCE outside the kernel.
  w_qkvt = jnp.concatenate([params["wq"], params["wk"], params["wv"]],
                           axis=0).astype(bf16)                       # (3H, H) [out, in]
  b_qkvt = jnp.concatenate([params["bq"], params["bk"], params["bv"]]
                           ).reshape(3 * HIDDEN, 1)
  w_o3 = params["wo"].T.reshape(HEADS, HEAD_DIM, HIDDEN).astype(bf16)  # per-head [in, out]

  def t(w):  # torch [out, in] -> [in, out], bf16 for the MXU.
    return w.T.astype(bf16)

  args = (
      emb, mask_bias,
      params["emb_ln_g"].reshape(1, HIDDEN), params["emb_ln_b"].reshape(1, HIDDEN),
      w_qkvt, b_qkvt,
      w_o3, params["bo"].reshape(1, HIDDEN),
      params["attn_ln_g"].reshape(1, HIDDEN), params["attn_ln_b"].reshape(1, HIDDEN),
      t(params["w_ffn1"]), params["b_ffn1"].reshape(1, FFN),
      t(params["w_ffn2"]), params["b_ffn2"].reshape(1, HIDDEN),
      params["ffn_ln_g"].reshape(1, HIDDEN), params["ffn_ln_b"].reshape(1, HIDDEN),
      t(params["w_pool"]), params["b_pool"].reshape(1, HIDDEN),
      params["w_out"].astype(jnp.float32),               # (1, H), f32 lane reduce
      params["b_out"].reshape(1, 1),
  )

  def resident(shape):  # full-array block, constant index_map -> stays in VMEM.
    n = len(shape)
    return pl.BlockSpec(shape, lambda b, _n=n: (0,) * _n)

  in_specs = [
      pl.BlockSpec((seq, HIDDEN), lambda b: (b, 0)),       # emb: per-batch row block
      pl.BlockSpec((1, 1, seq), lambda b: (b, 0, 0)),      # mask bias: per-batch
  ] + [resident(a.shape) for a in args[2:]]

  out = pl.pallas_call(
      functools.partial(_encoder_kernel, seq=seq),
      out_shape=jax.ShapeDtypeStruct((bsz, 1, 1), jnp.float32),
      grid=(bsz,),
      in_specs=in_specs,
      out_specs=pl.BlockSpec((1, 1, 1), lambda b: (b, 0, 0)),
      compiler_params=pltpu.CompilerParams(
          dimension_semantics=("parallel",),
          vmem_limit_bytes=8 * 1024 * 1024,
      ),
  )(*args)
  return out.reshape(bsz, 1)


if __name__ == "__main__":
  key = jax.random.PRNGKey(0)
  pkey, ikey = jax.random.split(key)
  params = init_params(pkey)

  B, S = 2, 8
  input_ids = jax.random.randint(ikey, (B, S), 0, VOCAB, dtype=jnp.int32)
  attention_mask = jnp.ones((B, S), jnp.int32)

  out = jax.jit(net_forward)(params, input_ids, attention_mask)
  out = jax.block_until_ready(out)
  assert out.shape == (B, 1) and out.dtype == jnp.float32
  print("KERNEL_OK")
</pallas_src>

<mosaic_0001>
module attributes {stable_mosaic.version = 11 : i64} {
  func.func @_encoder_kernel(%arg0: i32, %arg1: memref<8x128xf32, #tpu.memory_space<vmem>>, %arg2: memref<1x1x8xf32, #tpu.memory_space<vmem>>, %arg3: memref<1x128xf32, #tpu.memory_space<vmem>>, %arg4: memref<1x128xf32, #tpu.memory_space<vmem>>, %arg5: memref<384x128xbf16, #tpu.memory_space<vmem>>, %arg6: memref<384x1xf32, #tpu.memory_space<vmem>>, %arg7: memref<4x32x128xbf16, #tpu.memory_space<vmem>>, %arg8: memref<1x128xf32, #tpu.memory_space<vmem>>, %arg9: memref<1x128xf32, #tpu.memory_space<vmem>>, %arg10: memref<1x128xf32, #tpu.memory_space<vmem>>, %arg11: memref<128x256xbf16, #tpu.memory_space<vmem>>, %arg12: memref<1x256xf32, #tpu.memory_space<vmem>>, %arg13: memref<256x128xbf16, #tpu.memory_space<vmem>>, %arg14: memref<1x128xf32, #tpu.memory_space<vmem>>, %arg15: memref<1x128xf32, #tpu.memory_space<vmem>>, %arg16: memref<1x128xf32, #tpu.memory_space<vmem>>, %arg17: memref<128x128xbf16, #tpu.memory_space<vmem>>, %arg18: memref<1x128xf32, #tpu.memory_space<vmem>>, %arg19: memref<1x128xf32, #tpu.memory_space<vmem>>, %arg20: memref<1x1xf32, #tpu.memory_space<vmem>>, %arg21: memref<1x1x1xf32, #tpu.memory_space<vmem>>) attributes {dimension_semantics = [#tpu.dimension_semantics<parallel>], iteration_bounds = array<i64: 2>, scalar_prefetch = 0 : i64, scratch_operands = 0 : i64, tpu.core_type = #tpu.core_type<tc>, window_params = [{transform_indices = @transform_0, window_bounds = array<i64: 8, 128>}, {transform_indices = @transform_1, window_bounds = array<i64: 1, 1, 8>}, {pipeline_mode = #tpu.pipeline_mode<synchronous>, transform_indices = @transform_2, window_bounds = array<i64: 1, 128>}, {pipeline_mode = #tpu.pipeline_mode<synchronous>, transform_indices = @transform_3, window_bounds = array<i64: 1, 128>}, {pipeline_mode = #tpu.pipeline_mode<synchronous>, transform_indices = @transform_4, window_bounds = array<i64: 384, 128>}, {pipeline_mode = #tpu.pipeline_mode<synchronous>, transform_indices = @transform_5, window_bounds = array<i64: 384, 1>}, {pipeline_mode = #tpu.pipeline_mode<synchronous>, transform_indices = @transform_6, window_bounds = array<i64: 4, 32, 128>}, {pipeline_mode = #tpu.pipeline_mode<synchronous>, transform_indices = @transform_7, window_bounds = array<i64: 1, 128>}, {pipeline_mode = #tpu.pipeline_mode<synchronous>, transform_indices = @transform_8, window_bounds = array<i64: 1, 128>}, {pipeline_mode = #tpu.pipeline_mode<synchronous>, transform_indices = @transform_9, window_bounds = array<i64: 1, 128>}, {pipeline_mode = #tpu.pipeline_mode<synchronous>, transform_indices = @transform_10, window_bounds = array<i64: 128, 256>}, {pipeline_mode = #tpu.pipeline_mode<synchronous>, transform_indices = @transform_11, window_bounds = array<i64: 1, 256>}, {pipeline_mode = #tpu.pipeline_mode<synchronous>, transform_indices = @transform_12, window_bounds = array<i64: 256, 128>}, {pipeline_mode = #tpu.pipeline_mode<synchronous>, transform_indices = @transform_13, window_bounds = array<i64: 1, 128>}, {pipeline_mode = #tpu.pipeline_mode<synchronous>, transform_indices = @transform_14, window_bounds = array<i64: 1, 128>}, {pipeline_mode = #tpu.pipeline_mode<synchronous>, transform_indices = @transform_15, window_bounds = array<i64: 1, 128>}, {pipeline_mode = #tpu.pipeline_mode<synchronous>, transform_indices = @transform_16, window_bounds = array<i64: 128, 128>}, {pipeline_mode = #tpu.pipeline_mode<synchronous>, transform_indices = @transform_17, window_bounds = array<i64: 1, 128>}, {pipeline_mode = #tpu.pipeline_mode<synchronous>, transform_indices = @transform_18, window_bounds = array<i64: 1, 128>}, {pipeline_mode = #tpu.pipeline_mode<synchronous>, transform_indices = @transform_19, window_bounds = array<i64: 1, 1>}, {transform_indices = @transform_20, window_bounds = array<i64: 1, 1, 1>}]} {
    %c0 = arith.constant 0 : index
    %c0_0 = arith.constant 0 : index
    %0 = vector.load %arg1[%c0, %c0_0] : memref<8x128xf32, #tpu.memory_space<vmem>>, vector<8x128xf32>
    %cst = arith.constant dense<0.000000e+00> : vector<8xf32>
    %1 = vector.multi_reduction <add>, %0, %cst [1] : vector<8x128xf32> to vector<8xf32>
    %2 = vector.shape_cast %1 : vector<8xf32> to vector<8x1xf32>
    %3 = arith.mulf %0, %0 : vector<8x128xf32>
    %cst_1 = arith.constant dense<0.000000e+00> : vector<8xf32>
    %4 = vector.multi_reduction <add>, %3, %cst_1 [1] : vector<8x128xf32> to vector<8xf32>
    %5 = vector.shape_cast %4 : vector<8xf32> to vector<8x1xf32>
    %cst_2 = arith.constant 7.812500e-03 : f32
    %6 = vector.broadcast %cst_2 : f32 to vector<8x1xf32>
    %7 = arith.mulf %2, %6 : vector<8x1xf32>
    %cst_3 = arith.constant 7.812500e-03 : f32
    %8 = vector.broadcast %cst_3 : f32 to vector<8x1xf32>
    %9 = arith.mulf %5, %8 : vector<8x1xf32>
    %10 = arith.mulf %7, %7 : vector<8x1xf32>
    %11 = arith.subf %9, %10 : vector<8x1xf32>
    %12 = vector.broadcast %7 : vector<8x1xf32> to vector<8x128xf32>
    %13 = arith.subf %0, %12 : vector<8x128xf32>
    %cst_4 = arith.constant 9.99999996E-13 : f32
    %14 = vector.broadcast %cst_4 : f32 to vector<8x1xf32>
    %15 = arith.addf %11, %14 : vector<8x1xf32>
    %16 = math.rsqrt %15 : vector<8x1xf32>
    %17 = vector.broadcast %16 : vector<8x1xf32> to vector<8x128xf32>
    %18 = arith.mulf %13, %17 : vector<8x128xf32>
    %c0_5 = arith.constant 0 : index
    %c0_6 = arith.constant 0 : index
    %19 = vector.load %arg3[%c0_5, %c0_6] : memref<1x128xf32, #tpu.memory_space<vmem>>, vector<1x128xf32>
    %20 = vector.broadcast %19 : vector<1x128xf32> to vector<8x128xf32>
    %21 = arith.mulf %18, %20 : vector<8x128xf32>
    %c0_7 = arith.constant 0 : index
    %c0_8 = arith.constant 0 : index
    %22 = vector.load %arg4[%c0_7, %c0_8] : memref<1x128xf32, #tpu.memory_space<vmem>>, vector<1x128xf32>
    %23 = vector.broadcast %22 : vector<1x128xf32> to vector<8x128xf32>
    %24 = arith.addf %21, %23 : vector<8x128xf32>
    %c0_9 = arith.constant 0 : index
    %c0_10 = arith.constant 0 : index
    %25 = vector.load %arg5[%c0_9, %c0_10] : memref<384x128xbf16, #tpu.memory_space<vmem>>, vector<384x128xbf16>
    %26 = arith.truncf %24 : vector<8x128xf32> to vector<8x128xbf16>
    %cst_11 = arith.constant dense<0.000000e+00> : vector<384x8xf32>
    %27 = tpu.matmul %25, %26, %cst_11 {dimension_numbers = #tpu.dot_dimension_numbers<[1], [1], [0], [0], [0, 0, 1, 0], [], []>} : vector<384x128xbf16>, vector<8x128xbf16>, vector<384x8xf32> -> vector<384x8xf32>
    %c0_12 = arith.constant 0 : index
    %c0_13 = arith.constant 0 : index
    %28 = vector.load %arg6[%c0_12, %c0_13] : memref<384x1xf32, #tpu.memory_space<vmem>>, vector<384x1xf32>
    %29 = vector.broadcast %28 : vector<384x1xf32> to vector<384x8xf32>
    %30 = arith.addf %27, %29 : vector<384x8xf32>
    %31 = arith.truncf %30 : vector<384x8xf32> to vector<384x8xbf16>
    %32 = vector.extract_strided_slice %31 {offsets = [128, 0], sizes = [128, 8], strides = [1, 1]} : vector<384x8xbf16> to vector<128x8xbf16>
    %33 = vector.shape_cast %32 : vector<128x8xbf16> to vector<4x32x8xbf16>
    %34 = vector.extract_strided_slice %31 {offsets = [256, 0], sizes = [128, 8], strides = [1, 1]} : vector<384x8xbf16> to vector<128x8xbf16>
    %35 = vector.shape_cast %34 : vector<128x8xbf16> to vector<4x32x8xbf16>
    %36 = vector.extract_strided_slice %30 {offsets = [0, 0], sizes = [32, 8], strides = [1, 1]} : vector<384x8xf32> to vector<32x8xf32>
    %37 = tpu.transpose %36, [1, 0] : vector<32x8xf32> -> vector<8x32xf32>
    %38 = vector.extract_strided_slice %30 {offsets = [32, 0], sizes = [32, 8], strides = [1, 1]} : vector<384x8xf32> to vector<32x8xf32>
    %39 = tpu.transpose %38, [1, 0] : vector<32x8xf32> -> vector<8x32xf32>
    %40 = vector.extract_strided_slice %30 {offsets = [64, 0], sizes = [32, 8], strides = [1, 1]} : vector<384x8xf32> to vector<32x8xf32>
    %41 = tpu.transpose %40, [1, 0] : vector<32x8xf32> -> vector<8x32xf32>
    %42 = vector.extract_strided_slice %30 {offsets = [96, 0], sizes = [32, 8], strides = [1, 1]} : vector<384x8xf32> to vector<32x8xf32>
    %43 = tpu.transpose %42, [1, 0] : vector<32x8xf32> -> vector<8x32xf32>
    %44 = vector.shape_cast %37 : vector<8x32xf32> to vector<1x8x32xf32>
    %45 = vector.shape_cast %39 : vector<8x32xf32> to vector<1x8x32xf32>
    %46 = vector.shape_cast %41 : vector<8x32xf32> to vector<1x8x32xf32>
    %47 = vector.shape_cast %43 : vector<8x32xf32> to vector<1x8x32xf32>
    %48 = tpu.concatenate %44, %45, %46, %47 in 0 : vector<1x8x32xf32>, vector<1x8x32xf32>, vector<1x8x32xf32>, vector<1x8x32xf32> -> vector<4x8x32xf32>
    %49 = arith.truncf %48 : vector<4x8x32xf32> to vector<4x8x32xbf16>
    %cst_14 = arith.constant dense<0.000000e+00> : vector<4x8x8xf32>
    %50 = tpu.matmul %49, %33, %cst_14 {dimension_numbers = #tpu.dot_dimension_numbers<[2], [1], [1], [2], [0, 0, 0, 1, 1, 2], [0], [0]>} : vector<4x8x32xbf16>, vector<4x32x8xbf16>, vector<4x8x8xf32> -> vector<4x8x8xf32>
    %cst_15 = arith.constant 0.176776692 : f32
    %51 = vector.broadcast %cst_15 : f32 to vector<4x8x8xf32>
    %52 = arith.mulf %50, %51 : vector<4x8x8xf32>
    %c0_16 = arith.constant 0 : index
    %c0_17 = arith.constant 0 : index
    %c0_18 = arith.constant 0 : index
    %53 = vector.load %arg2[%c0_16, %c0_17, %c0_18] : memref<1x1x8xf32, #tpu.memory_space<vmem>>, vector<1x1x8xf32>
    %54 = vector.broadcast %53 : vector<1x1x8xf32> to vector<4x8x8xf32>
    %55 = arith.addf %52, %54 : vector<4x8x8xf32>
    %cst_19 = arith.constant dense<0xFF800000> : vector<4x8xf32>
    %56 = vector.multi_reduction <maximumf>, %55, %cst_19 [2] : vector<4x8x8xf32> to vector<4x8xf32>
    %57 = vector.shape_cast %56 : vector<4x8xf32> to vector<4x8x1xf32>
    %58 = vector.broadcast %57 : vector<4x8x1xf32> to vector<4x8x8xf32>
    %59 = arith.subf %55, %58 : vector<4x8x8xf32>
    %60 = math.exp %59 : vector<4x8x8xf32>
    %cst_20 = arith.constant dense<0.000000e+00> : vector<4x8xf32>
    %61 = vector.multi_reduction <add>, %60, %cst_20 [2] : vector<4x8x8xf32> to vector<4x8xf32>
    %62 = vector.shape_cast %61 : vector<4x8xf32> to vector<4x8x1xf32>
    %63 = tpu.reciprocal %62 {approx = true} : vector<4x8x1xf32> -> vector<4x8x1xf32>
    %64 = vector.broadcast %63 : vector<4x8x1xf32> to vector<4x8x8xf32>
    %65 = arith.mulf %60, %64 : vector<4x8x8xf32>
    %66 = arith.truncf %65 : vector<4x8x8xf32> to vector<4x8x8xbf16>
    %cst_21 = arith.constant dense<0.000000e+00> : vector<4x8x32xf32>
    %67 = tpu.matmul %66, %35, %cst_21 {dimension_numbers = #tpu.dot_dimension_numbers<[2], [2], [1], [1], [0, 0, 0, 1, 1, 1], [0], [0]>} : vector<4x8x8xbf16>, vector<4x32x8xbf16>, vector<4x8x32xf32> -> vector<4x8x32xf32>
    %68 = arith.truncf %67 : vector<4x8x32xf32> to vector<4x8x32xbf16>
    %c0_22 = arith.constant 0 : index
    %c0_23 = arith.constant 0 : index
    %c0_24 = arith.constant 0 : index
    %69 = vector.load %arg7[%c0_22, %c0_23, %c0_24] : memref<4x32x128xbf16, #tpu.memory_space<vmem>>, vector<4x32x128xbf16>
    %cst_25 = arith.constant dense<0.000000e+00> : vector<4x8x128xf32>
    %70 = tpu.matmul %68, %69, %cst_25 {dimension_numbers = #tpu.dot_dimension_numbers<[2], [1], [1], [2], [0, 0, 0, 1, 1, 2], [0], [0]>} : vector<4x8x32xbf16>, vector<4x32x128xbf16>, vector<4x8x128xf32> -> vector<4x8x128xf32>
    %71 = vector.extract_strided_slice %70 {offsets = [0, 0, 0], sizes = [1, 8, 128], strides = [1, 1, 1]} : vector<4x8x128xf32> to vector<1x8x128xf32>
    %72 = vector.shape_cast %71 : vector<1x8x128xf32> to vector<8x128xf32>
    %73 = vector.extract_strided_slice %70 {offsets = [1, 0, 0], sizes = [1, 8, 128], strides = [1, 1, 1]} : vector<4x8x128xf32> to vector<1x8x128xf32>
    %74 = vector.shape_cast %73 : vector<1x8x128xf32> to vector<8x128xf32>
    %75 = arith.addf %72, %74 : vector<8x128xf32>
    %76 = vector.extract_strided_slice %70 {offsets = [2, 0, 0], sizes = [1, 8, 128], strides = [1, 1, 1]} : vector<4x8x128xf32> to vector<1x8x128xf32>
    %77 = vector.shape_cast %76 : vector<1x8x128xf32> to vector<8x128xf32>
    %78 = arith.addf %75, %77 : vector<8x128xf32>
    %79 = vector.extract_strided_slice %70 {offsets = [3, 0, 0], sizes = [1, 8, 128], strides = [1, 1, 1]} : vector<4x8x128xf32> to vector<1x8x128xf32>
    %80 = vector.shape_cast %79 : vector<1x8x128xf32> to vector<8x128xf32>
    %81 = arith.addf %78, %80 : vector<8x128xf32>
    %c0_26 = arith.constant 0 : index
    %c0_27 = arith.constant 0 : index
    %82 = vector.load %arg8[%c0_26, %c0_27] : memref<1x128xf32, #tpu.memory_space<vmem>>, vector<1x128xf32>
    %83 = vector.broadcast %82 : vector<1x128xf32> to vector<8x128xf32>
    %84 = arith.addf %81, %83 : vector<8x128xf32>
    %85 = arith.addf %84, %24 : vector<8x128xf32>
    %cst_28 = arith.constant dense<0.000000e+00> : vector<8xf32>
    %86 = vector.multi_reduction <add>, %85, %cst_28 [1] : vector<8x128xf32> to vector<8xf32>
    %87 = vector.shape_cast %86 : vector<8xf32> to vector<8x1xf32>
    %88 = arith.mulf %85, %85 : vector<8x128xf32>
    %cst_29 = arith.constant dense<0.000000e+00> : vector<8xf32>
    %89 = vector.multi_reduction <add>, %88, %cst_29 [1] : vector<8x128xf32> to vector<8xf32>
    %90 = vector.shape_cast %89 : vector<8xf32> to vector<8x1xf32>
    %cst_30 = arith.constant 7.812500e-03 : f32
    %91 = vector.broadcast %cst_30 : f32 to vector<8x1xf32>
    %92 = arith.mulf %87, %91 : vector<8x1xf32>
    %cst_31 = arith.constant 7.812500e-03 : f32
    %93 = vector.broadcast %cst_31 : f32 to vector<8x1xf32>
    %94 = arith.mulf %90, %93 : vector<8x1xf32>
    %95 = arith.mulf %92, %92 : vector<8x1xf32>
    %96 = arith.subf %94, %95 : vector<8x1xf32>
    %97 = vector.broadcast %92 : vector<8x1xf32> to vector<8x128xf32>
    %98 = arith.subf %85, %97 : vector<8x128xf32>
    %cst_32 = arith.constant 9.99999996E-13 : f32
    %99 = vector.broadcast %cst_32 : f32 to vector<8x1xf32>
    %100 = arith.addf %96, %99 : vector<8x1xf32>
    %101 = math.rsqrt %100 : vector<8x1xf32>
    %102 = vector.broadcast %101 : vector<8x1xf32> to vector<8x128xf32>
    %103 = arith.mulf %98, %102 : vector<8x128xf32>
    %c0_33 = arith.constant 0 : index
    %c0_34 = arith.constant 0 : index
    %104 = vector.load %arg9[%c0_33, %c0_34] : memref<1x128xf32, #tpu.memory_space<vmem>>, vector<1x128xf32>
    %105 = vector.broadcast %104 : vector<1x128xf32> to vector<8x128xf32>
    %106 = arith.mulf %103, %105 : vector<8x128xf32>
    %c0_35 = arith.constant 0 : index
    %c0_36 = arith.constant 0 : index
    %107 = vector.load %arg10[%c0_35, %c0_36] : memref<1x128xf32, #tpu.memory_space<vmem>>, vector<1x128xf32>
    %108 = vector.broadcast %107 : vector<1x128xf32> to vector<8x128xf32>
    %109 = arith.addf %106, %108 : vector<8x128xf32>
    %110 = arith.truncf %109 : vector<8x128xf32> to vector<8x128xbf16>
    %c0_37 = arith.constant 0 : index
    %c0_38 = arith.constant 0 : index
    %111 = vector.load %arg11[%c0_37, %c0_38] : memref<128x256xbf16, #tpu.memory_space<vmem>>, vector<128x256xbf16>
    %cst_39 = arith.constant dense<0.000000e+00> : vector<8x256xf32>
    %112 = tpu.matmul %110, %111, %cst_39 {dimension_numbers = #tpu.dot_dimension_numbers<[1], [0], [0], [1], [0, 0, 1, 1], [], []>} : vector<8x128xbf16>, vector<128x256xbf16>, vector<8x256xf32> -> vector<8x256xf32>
    %c0_40 = arith.constant 0 : index
    %c0_41 = arith.constant 0 : index
    %113 = vector.load %arg12[%c0_40, %c0_41] : memref<1x256xf32, #tpu.memory_space<vmem>>, vector<1x256xf32>
    %114 = vector.broadcast %113 : vector<1x256xf32> to vector<8x256xf32>
    %115 = arith.addf %112, %114 : vector<8x256xf32>
    %116 = arith.mulf %115, %115 : vector<8x256xf32>
    %117 = arith.mulf %115, %116 : vector<8x256xf32>
    %cst_42 = arith.constant 4.471500e-02 : f32
    %118 = vector.broadcast %cst_42 : f32 to vector<8x256xf32>
    %119 = arith.mulf %118, %117 : vector<8x256xf32>
    %120 = arith.addf %115, %119 : vector<8x256xf32>
    %cst_43 = arith.constant 0.797884583 : f32
    %121 = vector.broadcast %cst_43 : f32 to vector<8x256xf32>
    %122 = arith.mulf %121, %120 : vector<8x256xf32>
    %123 = math.tanh %122 : vector<8x256xf32>
    %cst_44 = arith.constant 1.000000e+00 : f32
    %124 = vector.broadcast %cst_44 : f32 to vector<8x256xf32>
    %125 = arith.addf %124, %123 : vector<8x256xf32>
    %cst_45 = arith.constant 5.000000e-01 : f32
    %126 = vector.broadcast %cst_45 : f32 to vector<8x256xf32>
    %127 = arith.mulf %126, %125 : vector<8x256xf32>
    %128 = arith.mulf %115, %127 : vector<8x256xf32>
    %129 = arith.truncf %128 : vector<8x256xf32> to vector<8x256xbf16>
    %c0_46 = arith.constant 0 : index
    %c0_47 = arith.constant 0 : index
    %130 = vector.load %arg13[%c0_46, %c0_47] : memref<256x128xbf16, #tpu.memory_space<vmem>>, vector<256x128xbf16>
    %cst_48 = arith.constant dense<0.000000e+00> : vector<8x128xf32>
    %131 = tpu.matmul %129, %130, %cst_48 {dimension_numbers = #tpu.dot_dimension_numbers<[1], [0], [0], [1], [0, 0, 1, 1], [], []>} : vector<8x256xbf16>, vector<256x128xbf16>, vector<8x128xf32> -> vector<8x128xf32>
    %c0_49 = arith.constant 0 : index
    %c0_50 = arith.constant 0 : index
    %132 = vector.load %arg14[%c0_49, %c0_50] : memref<1x128xf32, #tpu.memory_space<vmem>>, vector<1x128xf32>
    %133 = vector.broadcast %132 : vector<1x128xf32> to vector<8x128xf32>
    %134 = arith.addf %131, %133 : vector<8x128xf32>
    %135 = arith.addf %134, %109 : vector<8x128xf32>
    %cst_51 = arith.constant dense<0.000000e+00> : vector<8xf32>
    %136 = vector.multi_reduction <add>, %135, %cst_51 [1] : vector<8x128xf32> to vector<8xf32>
    %137 = vector.shape_cast %136 : vector<8xf32> to vector<8x1xf32>
    %138 = arith.mulf %135, %135 : vector<8x128xf32>
    %cst_52 = arith.constant dense<0.000000e+00> : vector<8xf32>
    %139 = vector.multi_reduction <add>, %138, %cst_52 [1] : vector<8x128xf32> to vector<8xf32>
    %140 = vector.shape_cast %139 : vector<8xf32> to vector<8x1xf32>
    %cst_53 = arith.constant 7.812500e-03 : f32
    %141 = vector.broadcast %cst_53 : f32 to vector<8x1xf32>
    %142 = arith.mulf %137, %141 : vector<8x1xf32>
    %cst_54 = arith.constant 7.812500e-03 : f32
    %143 = vector.broadcast %cst_54 : f32 to vector<8x1xf32>
    %144 = arith.mulf %140, %143 : vector<8x1xf32>
    %145 = arith.mulf %142, %142 : vector<8x1xf32>
    %146 = arith.subf %144, %145 : vector<8x1xf32>
    %147 = vector.broadcast %142 : vector<8x1xf32> to vector<8x128xf32>
    %148 = arith.subf %135, %147 : vector<8x128xf32>
    %cst_55 = arith.constant 9.99999996E-13 : f32
    %149 = vector.broadcast %cst_55 : f32 to vector<8x1xf32>
    %150 = arith.addf %146, %149 : vector<8x1xf32>
    %151 = math.rsqrt %150 : vector<8x1xf32>
    %152 = vector.broadcast %151 : vector<8x1xf32> to vector<8x128xf32>
    %153 = arith.mulf %148, %152 : vector<8x128xf32>
    %c0_56 = arith.constant 0 : index
    %c0_57 = arith.constant 0 : index
    %154 = vector.load %arg15[%c0_56, %c0_57] : memref<1x128xf32, #tpu.memory_space<vmem>>, vector<1x128xf32>
    %155 = vector.broadcast %154 : vector<1x128xf32> to vector<8x128xf32>
    %156 = arith.mulf %153, %155 : vector<8x128xf32>
    %c0_58 = arith.constant 0 : index
    %c0_59 = arith.constant 0 : index
    %157 = vector.load %arg16[%c0_58, %c0_59] : memref<1x128xf32, #tpu.memory_space<vmem>>, vector<1x128xf32>
    %158 = vector.broadcast %157 : vector<1x128xf32> to vector<8x128xf32>
    %159 = arith.addf %156, %158 : vector<8x128xf32>
    %160 = vector.extract_strided_slice %159 {offsets = [0, 0], sizes = [1, 128], strides = [1, 1]} : vector<8x128xf32> to vector<1x128xf32>
    %161 = arith.truncf %160 : vector<1x128xf32> to vector<1x128xbf16>
    %c0_60 = arith.constant 0 : index
    %c0_61 = arith.constant 0 : index
    %162 = vector.load %arg17[%c0_60, %c0_61] : memref<128x128xbf16, #tpu.memory_space<vmem>>, vector<128x128xbf16>
    %cst_62 = arith.constant dense<0.000000e+00> : vector<1x128xf32>
    %163 = tpu.matmul %161, %162, %cst_62 {dimension_numbers = #tpu.dot_dimension_numbers<[1], [0], [0], [1], [0, 0, 1, 1], [], []>} : vector<1x128xbf16>, vector<128x128xbf16>, vector<1x128xf32> -> vector<1x128xf32>
    %c0_63 = arith.constant 0 : index
    %c0_64 = arith.constant 0 : index
    %164 = vector.load %arg18[%c0_63, %c0_64] : memref<1x128xf32, #tpu.memory_space<vmem>>, vector<1x128xf32>
    %165 = arith.addf %163, %164 : vector<1x128xf32>
    %166 = math.tanh %165 : vector<1x128xf32>
    %c0_65 = arith.constant 0 : index
    %c0_66 = arith.constant 0 : index
    %167 = vector.load %arg19[%c0_65, %c0_66] : memref<1x128xf32, #tpu.memory_space<vmem>>, vector<1x128xf32>
    %168 = arith.mulf %166, %167 : vector<1x128xf32>
    %cst_67 = arith.constant dense<0.000000e+00> : vector<1xf32>
    %169 = vector.multi_reduction <add>, %168, %cst_67 [1] : vector<1x128xf32> to vector<1xf32>
    %170 = vector.shape_cast %169 : vector<1xf32> to vector<1x1xf32>
    %c0_68 = arith.constant 0 : index
    %c0_69 = arith.constant 0 : index
    %171 = vector.load %arg20[%c0_68, %c0_69] : memref<1x1xf32, #tpu.memory_space<vmem>>, vector<1x1xf32>
    %172 = arith.addf %170, %171 : vector<1x1xf32>
    %173 = vector.shape_cast %172 : vector<1x1xf32> to vector<1x1x1xf32>
    %c0_70 = arith.constant 0 : index
    %c0_71 = arith.constant 0 : index
    %c0_72 = arith.constant 0 : index
    %174 = vector.load %arg21[%c0_70, %c0_71, %c0_72] : memref<1x1x1xf32, #tpu.memory_space<vmem>>, vector<1x1x1xf32>
    tpu.vector_store %arg21[%c0_70, %c0_71, %c0_72], %173 {strides = array<i32>} : memref<1x1x1xf32, #tpu.memory_space<vmem>>, vector<1x1x1xf32>,
    return
  }
  func.func @transform_0(%arg0: i32) -> (i32, i32) {
    %c0_i32 = arith.constant 0 : i32
    %c0_i32_0 = arith.constant 0 : i32
    return %arg0, %c0_i32 : i32, i32
  }
  func.func @transform_1(%arg0: i32) -> (i32, i32, i32) {
    %c0_i32 = arith.constant 0 : i32
    %c0_i32_0 = arith.constant 0 : i32
    %c0_i32_1 = arith.constant 0 : i32
    return %arg0, %c0_i32, %c0_i32_0 : i32, i32, i32
  }
  func.func @transform_2(%arg0: i32) -> (i32, i32) {
    %c0_i32 = arith.constant 0 : i32
    %c0_i32_0 = arith.constant 0 : i32
    %c0_i32_1 = arith.constant 0 : i32
    return %c0_i32, %c0_i32_0 : i32, i32
  }
  func.func @transform_3(%arg0: i32) -> (i32, i32) {
    %c0_i32 = arith.constant 0 : i32
    %c0_i32_0 = arith.constant 0 : i32
    %c0_i32_1 = arith.constant 0 : i32
    return %c0_i32, %c0_i32_0 : i32, i32
  }
  func.func @transform_4(%arg0: i32) -> (i32, i32) {
    %c0_i32 = arith.constant 0 : i32
    %c0_i32_0 = arith.constant 0 : i32
    %c0_i32_1 = arith.constant 0 : i32
    return %c0_i32, %c0_i32_0 : i32, i32
  }
  func.func @transform_5(%arg0: i32) -> (i32, i32) {
    %c0_i32 = arith.constant 0 : i32
    %c0_i32_0 = arith.constant 0 : i32
    %c0_i32_1 = arith.constant 0 : i32
    return %c0_i32, %c0_i32_0 : i32, i32
  }
  func.func @transform_6(%arg0: i32) -> (i32, i32, i32) {
    %c0_i32 = arith.constant 0 : i32
    %c0_i32_0 = arith.constant 0 : i32
    %c0_i32_1 = arith.constant 0 : i32
    %c0_i32_2 = arith.constant 0 : i32
    return %c0_i32, %c0_i32_0, %c0_i32_1 : i32, i32, i32
  }
  func.func @transform_7(%arg0: i32) -> (i32, i32) {
    %c0_i32 = arith.constant 0 : i32
    %c0_i32_0 = arith.constant 0 : i32
    %c0_i32_1 = arith.constant 0 : i32
    return %c0_i32, %c0_i32_0 : i32, i32
  }
  func.func @transform_8(%arg0: i32) -> (i32, i32) {
    %c0_i32 = arith.constant 0 : i32
    %c0_i32_0 = arith.constant 0 : i32
    %c0_i32_1 = arith.constant 0 : i32
    return %c0_i32, %c0_i32_0 : i32, i32
  }
  func.func @transform_9(%arg0: i32) -> (i32, i32) {
    %c0_i32 = arith.constant 0 : i32
    %c0_i32_0 = arith.constant 0 : i32
    %c0_i32_1 = arith.constant 0 : i32
    return %c0_i32, %c0_i32_0 : i32, i32
  }
  func.func @transform_10(%arg0: i32) -> (i32, i32) {
    %c0_i32 = arith.constant 0 : i32
    %c0_i32_0 = arith.constant 0 : i32
    %c0_i32_1 = arith.constant 0 : i32
    return %c0_i32, %c0_i32_0 : i32, i32
  }
  func.func @transform_11(%arg0: i32) -> (i32, i32) {
    %c0_i32 = arith.constant 0 : i32
    %c0_i32_0 = arith.constant 0 : i32
    %c0_i32_1 = arith.constant 0 : i32
    return %c0_i32, %c0_i32_0 : i32, i32
  }
  func.func @transform_12(%arg0: i32) -> (i32, i32) {
    %c0_i32 = arith.constant 0 : i32
    %c0_i32_0 = arith.constant 0 : i32
    %c0_i32_1 = arith.constant 0 : i32
    return %c0_i32, %c0_i32_0 : i32, i32
  }
  func.func @transform_13(%arg0: i32) -> (i32, i32) {
    %c0_i32 = arith.constant 0 : i32
    %c0_i32_0 = arith.constant 0 : i32
    %c0_i32_1 = arith.constant 0 : i32
    return %c0_i32, %c0_i32_0 : i32, i32
  }
  func.func @transform_14(%arg0: i32) -> (i32, i32) {
    %c0_i32 = arith.constant 0 : i32
    %c0_i32_0 = arith.constant 0 : i32
    %c0_i32_1 = arith.constant 0 : i32
    return %c0_i32, %c0_i32_0 : i32, i32
  }
  func.func @transform_15(%arg0: i32) -> (i32, i32) {
    %c0_i32 = arith.constant 0 : i32
    %c0_i32_0 = arith.constant 0 : i32
    %c0_i32_1 = arith.constant 0 : i32
    return %c0_i32, %c0_i32_0 : i32, i32
  }
  func.func @transform_16(%arg0: i32) -> (i32, i32) {
    %c0_i32 = arith.constant 0 : i32
    %c0_i32_0 = arith.constant 0 : i32
    %c0_i32_1 = arith.constant 0 : i32
    return %c0_i32, %c0_i32_0 : i32, i32
  }
  func.func @transform_17(%arg0: i32) -> (i32, i32) {
    %c0_i32 = arith.constant 0 : i32
    %c0_i32_0 = arith.constant 0 : i32
    %c0_i32_1 = arith.constant 0 : i32
    return %c0_i32, %c0_i32_0 : i32, i32
  }
  func.func @transform_18(%arg0: i32) -> (i32, i32) {
    %c0_i32 = arith.constant 0 : i32
    %c0_i32_0 = arith.constant 0 : i32
    %c0_i32_1 = arith.constant 0 : i32
    return %c0_i32, %c0_i32_0 : i32, i32
  }
  func.func @transform_19(%arg0: i32) -> (i32, i32) {
    %c0_i32 = arith.constant 0 : i32
    %c0_i32_0 = arith.constant 0 : i32
    %c0_i32_1 = arith.constant 0 : i32
    return %c0_i32, %c0_i32_0 : i32, i32
  }
  func.func @transform_20(%arg0: i32) -> (i32, i32, i32) {
    %c0_i32 = arith.constant 0 : i32
    %c0_i32_0 = arith.constant 0 : i32
    %c0_i32_1 = arith.constant 0 : i32
    return %arg0, %c0_i32, %c0_i32_0 : i32, i32, i32
  }
}

</mosaic_0001>

<bundles_post_ra>
// kernel: net_forward.1
= control target key start
LH: loop header
LB: loop body
LE: loop exit
PB: predicated region body
PF: predicated region fallthrough
CT: control target
= control target key end

     0   :  { %s2984_s23 = smov 0   ;;  %s3587_s0 = inlined_call_operand.vmem [shape: f32[16,128], index: 0, kind: input, shape index: {}]   ;;  %s3588_s1 = inlined_call_operand.vmem [shape: f32[2,1,8], index: 1, kind: input, shape index: {}]   ;;  %s3589_s2 = inlined_call_operand.vmem [shape: f32[1,128], index: 2, kind: input, shape index: {}]   ;;  %s3590_s3 = inlined_call_operand.vmem [shape: f32[1,128], index: 3, kind: input, shape index: {}]   ;;  %s3591_s4 = inlined_call_operand.vmem [shape: bf16[384,128], index: 4, kind: input, shape index: {}]   ;;  %s3592_s5 = inlined_call_operand.vmem [shape: f32[384,1], index: 5, kind: input, shape index: {}]   ;;  %s3593_s6 = inlined_call_operand.vmem [shape: bf16[4,32,128], index: 6, kind: input, shape index: {}]   ;;  %s3594_s7 = inlined_call_operand.vmem [shape: f32[1,128], index: 7, kind: input, shape index: {}]   ;;  %s3595_s8 = inlined_call_operand.vmem [shape: f32[1,128], index: 8, kind: input, shape index: {}]   ;;  %s3596_s9 = inlined_call_operand.vmem [shape: f32[1,128], index: 9, kind: input, shape index: {}]   ;;  %s3597_s10 = inlined_call_operand.vmem [shape: bf16[128,256], index: 10, kind: input, shape index: {}]   ;;  %s3598_s11 = inlined_call_operand.vmem [shape: f32[1,256], index: 11, kind: input, shape index: {}]   ;;  %s3599_s12 = inlined_call_operand.vmem [shape: bf16[256,128], index: 12, kind: input, shape index: {}]   ;;  %s3600_s13 = inlined_call_operand.vmem [shape: f32[1,128], index: 13, kind: input, shape index: {}]   ;;  %s3601_s14 = inlined_call_operand.vmem [shape: f32[1,128], index: 14, kind: input, shape index: {}]   ;;  %s3602_s15 = inlined_call_operand.vmem [shape: f32[1,128], index: 15, kind: input, shape index: {}]   ;;  %s3603_s16 = inlined_call_operand.vmem [shape: bf16[128,128], index: 16, kind: input, shape index: {}]   ;;  %s3604_s17 = inlined_call_operand.vmem [shape: f32[1,128], index: 17, kind: input, shape index: {}]   ;;  %s3605_s18 = inlined_call_operand.vmem [shape: f32[1,128], index: 18, kind: input, shape index: {}]   ;;  %s3606_s19 = inlined_call_operand.<no memory space> [shape: f32[1,1], index: 19, kind: input, shape index: {}]   ;;  %s3607_s20 = inlined_call_operand.vmem [shape: f32[2,1,1], index: 20, kind: output, shape index: {}]  }
   0x1   :  { %3610 = sst [smem:[#allocation3_spill]] %s3587_s0  ;;  %v25_v0 = vstv %s3606_s19 }
   0x2   :  { %3611 = sst [smem:[#allocation4_spill]] %s3588_s1  ;;  %26 = vst [vmem:[#allocation2] sm:$0x1] %v25_v0 }
   0x3   :  { %3612 = sst [smem:[#allocation5_spill]] %s3589_s2 }
   0x4   :  { %3613 = sst [smem:[#allocation6_spill]] %s3590_s3 }
   0x5   :  { %3614 = sst [smem:[#allocation7_spill]] %s3591_s4 }
   0x6 LB: > { %s2408_s24 = sadd.s32 4294967295, %s2873_s23   ;;  %p2412_p0 = scmp.ge.s32.totalorder %s2873_s23, 1  ;;  %s2873_s23 = sphi %s2984_s23, %s32_s23  }
   0x7   : > { %p571_p1 = scmp.lt.s32.totalorder %s2873_s23, 3 }
   0x9   : > { %p572_p2 = pnand %p2412_p0, %p571_p1 }
   0xa   : > { %p629_p3 = scmp.lt.s32.totalorder (!%p572_p2), %s2408_s24, 1  ;;  %s3615_s27 = sld [smem:[#allocation3_spill]] (!%p572_p2) }
   0xb   : > { %575 = sbr.rel (%p572_p2) target bundleno = 2096 (0x830), region = 100  ;;  %s3616_s4 = sld [smem:[#allocation5_spill]] (!%p572_p2) }
   0xc   : > { %s3617_s0 = sld [smem:[#allocation6_spill]] (!%p572_p2) }
   0xd   : > { %s3619_s30 = sld [smem:[#allocation4_spill]] (!%p572_p2) }
  0x10   : > { %v722_v1 = vld [vmem:[%s3592_s5] sm:$0xff]  ;;  %v2875_v2 = vmov 0   ;;  %s3621_s24 = smov (!%p629_p3, %s2408_s24), 1  ;;  %v723_v4 = vld [vmem:[%s3592_s5 + $0x8] sm:$0xff]  ;;  %v741_v7 = vld [vmem:[%s3592_s5 + $0x98] sm:$0xff]  ;;  %vm1459_vm3 = vcmask 261120  }
  0x11   : > { %2801 = vset.pattern.permute.xlu1 %v2875_v2  ;;  %2802 = vset.pattern.permute.xlu2 %v2875_v2  ;;  %s2413_s19 = sshll.u32 %s3621_s24, 3  ;;  %v730_v6 = vld [vmem:[%s3592_s5 + $0x40] sm:$0xff]  ;;  %v728_v9 = vld [vmem:[%s3592_s5 + $0x30] sm:$0xff]  ;;  %v739_v10 = vld [vmem:[%s3592_s5 + $0x88] sm:$0xff]  ;;  %vm1572_vm4 = vcmask 64512   ;;  %vm2344_vm11 = vcmask 1040384  }
  0x12   : > { %772 = vperm.xlu1 %2801, %v722_v1   ;;  %2803 = vset.pattern.permute.xlu0 %v2875_v2  ;;  %s632_s28 = scalar_lea.vmem %s3615_s27, %s2413_s19  ;;  %v734_v8 = vld [vmem:[%s3592_s5 + $0x60] sm:$0xff]  ;;  %v729_v11 = vld [vmem:[%s3592_s5 + $0x38] sm:$0xff]  ;;  %v748_v13 = vld [vmem:[%s3592_s5 + $0xd0] sm:$0xff]  ;;  %s638_s27 = scalar_lea.vmem %s3607_s20, %s3621_s24  ;;  %vm2350_vm12 = vcmask 0  }
  0x13   : > { %v3001_v3 = vld [vmem:[%s632_s28] sm:$0xff]  ;;  %v737_v12 = vld [vmem:[%s3592_s5 + $0x78] sm:$0xff]  ;;  %v743_v14 = vld [vmem:[%s3592_s5 + $0xa8] sm:$0xff] }
  0x14   : > { %641 = vadd.xlane.f32.xlu0 %v3001_v3  ;;  %v643_v5 = vmul.f32 %v3001_v3, %v3001_v3  ;;  %v746_v15 = vld [vmem:[%s3592_s5 + $0xc0] sm:$0xff]  ;;  %v724_v16 = vld [vmem:[%s3592_s5 + $0x10] sm:$0xff]  ;;  %v751_v17 = vld [vmem:[%s3592_s5 + $0xe8] sm:$0xff] }
  0x15   : > { %782 = vperm.xlu2 %2802, %v724_v16   ;;  %v725_v18 = vld [vmem:[%s3592_s5 + $0x18] sm:$0xff]  ;;  %v740_v20 = vld [vmem:[%s3592_s5 + $0x90] sm:$0xff]  ;;  %v754_v21 = vld [vmem:[%s3592_s5 + $0x100] sm:$0xff] }
  0x16   : > { %v757_v19 = vld [vmem:[%s3592_s5 + $0x118] sm:$0xff]  ;;  %v727_v24 = vld [vmem:[%s3592_s5 + $0x28] sm:$0xff]  ;;  %v768_v32 = vld [vmem:[%s3592_s5 + $0x170] sm:$0xff] }
  0x17   : > { %v755_v25 = vld [vmem:[%s3592_s5 + $0x108] sm:$0xff]  ;;  %v726_v33 = vld [vmem:[%s3592_s5 + $0x20] sm:$0xff]  ;;  %v769_v36 = vld [vmem:[%s3592_s5 + $0x178] sm:$0xff] }
  0x18   : > { %v731_v31 = vld [vmem:[%s3592_s5 + $0x48] sm:$0xff]  ;;  %v738_v35 = vld [vmem:[%s3592_s5 + $0x80] sm:$0xff]  ;;  %v732_v38 = vld [vmem:[%s3592_s5 + $0x50] sm:$0xff] }
  0x19   : > { %v735_v42 = vld [vmem:[%s3592_s5 + $0x68] sm:$0xff]  ;;  %v764_v43 = vld [vmem:[%s3592_s5 + $0x150] sm:$0xff]  ;;  %v2830_v46 = vld [vmem:[%s3616_s4] ss:$0 sm:$0xff]  ;;  %s3618_s4 = sld [smem:[#allocation7_spill]] }
  0x1a   : > { %777 = vperm.xlu1 %2801, %v723_v4   ;;  %v2831_v49 = vld [vmem:[%s3617_s0] ss:$0 sm:$0xff]  ;;  %v733_v50 = vld [vmem:[%s3592_s5 + $0x58] sm:$0xff]  ;;  %v736_v53 = vld [vmem:[%s3592_s5 + $0x70] sm:$0xff]  ;;  %s635_s0 = scalar_lea.vmem %s3619_s30, %s3621_s24 }
  0x1b   : > { %v766_v54 = vld [vmem:[%s3592_s5 + $0x160] sm:$0xff]  ;;  %v745_v56 = vld [vmem:[%s3592_s5 + $0xb8] sm:$0xff]  ;;  %v744_v61 = vld [vmem:[%s3592_s5 + $0xb0] sm:$0xff] }
  0x1c   : > { %644 = vadd.xlane.f32.xlu0 %v643_v5  ;;  %v758_v62 = vld [vmem:[%s3592_s5 + $0x120] sm:$0xff]  ;;  %v749_v0 = vld [vmem:[%s3592_s5 + $0xd8] sm:$0xff] }
  0x1d   : > { %787 = vperm.xlu2 %2802, %v725_v18   ;;  %v742_v63 = vld [vmem:[%s3592_s5 + $0xa0] sm:$0xff]  ;;  %v753_v1 = vld [vmem:[%s3592_s5 + $0xf8] sm:$0xff] }
  0x1f   : > { %v2716_v57 = vld [vmem:[%s3618_s4] sm:$0xff]  ;;  %v2734_v60 = vld [vmem:[%s3618_s4 + $0x90] sm:$0xff]  ;;  %v2717_v2 = vld [vmem:[%s3618_s4 + $0x8] sm:$0xff] }
  0x20   : > { %v2728_v58 = vld [vmem:[%s3618_s4 + $0x60] sm:$0xff]  ;;  %v2733_v4 = vld [vmem:[%s3618_s4 + $0x88] sm:$0xff]  ;;  %v2735_v5 = vld [vmem:[%s3618_s4 + $0x98] sm:$0xff] }
  0x21   : > { %v2732_v59 = vld [vmem:[%s3618_s4 + $0x80] sm:$0xff] }
  0x22   : > { %812 = vperm.xlu1 %2801, %v730_v6   ;;  %v752_v6 = vld [vmem:[%s3592_s5 + $0xf0] sm:$0xff] }
  0x25   : > { %862 = vperm.xlu2 %2802, %v740_v20  }
  0x2a   : > { %867 = vperm.xlu1 %2801, %v741_v7   ;;  %v750_v7 = vld [vmem:[%s3592_s5 + $0xe0] sm:$0xff] }
  0x2d   : > { %797 = vperm.xlu2 %2802, %v727_v24  }
  0x30   : > { %792 = vperm.xlu0 %2803, %v726_v33  }
  0x32   : > { %832 = vperm.xlu1 %2801, %v734_v8   ;;  %v747_v8 = vld [vmem:[%s3592_s5 + $0xc8] sm:$0xff] }
  0x35   : > { %817 = vperm.xlu2 %2802, %v731_v31   ;;  %v2722_v31 = vld [vmem:[%s3618_s4 + $0x30] sm:$0xff] }
  0x38   : > { %822 = vperm.xlu0 %2803, %v732_v38  }
  0x3a   : > { %802 = vperm.xlu1 %2801, %v728_v9   ;;  %v2718_v9 = vld [vmem:[%s3618_s4 + $0x10] sm:$0xff] }
  0x3d   : > { %852 = vperm.xlu2 %2802, %v738_v35  }
  0x40   : > { %827 = vperm.xlu0 %2803, %v733_v50  }
  0x42   : > { %857 = vperm.xlu1 %2801, %v739_v10   ;;  %v2730_v10 = vld [vmem:[%s3618_s4 + $0x70] sm:$0xff] }
  0x45   : > { %837 = vperm.xlu2 %2802, %v735_v42  }
  0x48   : > { %887 = vperm.xlu0 %2803, %v745_v56  }
  0x4a   : > { %807 = vperm.xlu1 %2801, %v729_v11   ;;  %v2736_v11 = vld [vmem:[%s3618_s4 + $0xa0] sm:$0xff] }
  0x4d   : > { %842 = vperm.xlu2 %2802, %v736_v53  }
  0x50   : > { %872 = vperm.xlu0 %2803, %v742_v63  }
  0x52   : > { %847 = vperm.xlu1 %2801, %v737_v12  }
  0x55   : > { %882 = vperm.xlu2 %2802, %v744_v61  }
  0x58   : > { %927 = vperm.xlu0 %2803, %v753_v1  }
  0x5a   : > { %902 = vperm.xlu1 %2801, %v748_v13  }
  0x5d   : > { %907 = vperm.xlu2 %2802, %v749_v0  }
  0x60   : > { %912 = vperm.xlu0 %2803, %v750_v7  }
  0x62   : > { %877 = vperm.xlu1 %2801, %v743_v14   ;;  %v2719_v14 = vld [vmem:[%s3618_s4 + $0x18] sm:$0xff] }
  0x65   : > { %922 = vperm.xlu2 %2802, %v752_v6  }
  0x6a   : > { %892 = vperm.xlu1 %2801, %v746_v15   ;;  %v2731_v15 = vld [vmem:[%s3618_s4 + $0x78] sm:$0xff] }
  0x6d   : > { %897 = vperm.xlu2 %2802, %v747_v8  }
  0x6f   : > { %v3167_v12 = vpop.permute.xlu2 %782 }
  0x72   : > { %917 = vperm.xlu1 %2801, %v751_v17   ;;  %v2737_v17 = vld [vmem:[%s3618_s4 + $0xa8] sm:$0xff] }
  0x77   : > { %v3177_v16 = vpop.permute.xlu2 %787 }
  0x7a   : > { %947 = vperm.xlu1 %2801, %v757_v19  }
  0x7f   : > { %v3184_v19 = vpop.permute.xlu2 %862 }
  0x82   : > { %932 = vperm.xlu1 %2801, %v754_v21   ;;  %v2720_v21 = vld [vmem:[%s3618_s4 + $0x20] sm:$0xff] }
  0x84   : > { %v3169_v13 = vpop.permute.xlu1 %772 }
  0x87   : > { %v642_v22 = vpop.xlane.xlu0 %641 }
  0x88   : > { %v646_v23 = vmul.f32 0.0078125, %v642_v22  ;;  %v2738_v22 = vld [vmem:[%s3618_s4 + $0xb0] sm:$0xff] }
  0x8a   : > { %937 = vperm.xlu1 %2801, %v755_v25   ;;  %v648_v27 = vmul.f32 %v646_v23, %v646_v23  ;;  %v650_v45 = vsub.f32 %v3001_v3, %v646_v23  ;;  %v2729_v3 = vld [vmem:[%s3618_s4 + $0x68] sm:$0xff]  ;;  %v3194_v23 = vpop.permute.xlu2 %797 }
  0x8c   : > { %v3182_v18 = vpop.permute.xlu1 %777 }
  0x8f   : > { %v645_v26 = vpop.xlane.xlu0 %644 }
  0x90   : > { %v647_v28 = vmul.f32 0.0078125, %v645_v26  ;;  %v2721_v26 = vld [vmem:[%s3618_s4 + $0x28] sm:$0xff] }
  0x92   : > { %v649_v29 = vsub.f32 %v647_v28, %v648_v27  ;;  %1002 = vperm.xlu1 %2801, %v768_v32   ;;  %v3198_v25 = vpop.permute.xlu2 %817  ;;  %v2739_v28 = vld [vmem:[%s3618_s4 + $0xb8] sm:$0xff] }
  0x94   : > { %v651_v30 = vadd.f32 1e-12, %v649_v29  ;;  %v3186_v20 = vpop.permute.xlu1 %812 }
  0x96   : > { %2839 = vrsqrt.f32 %v651_v30  ;;  %vm658_vm1 = vweird.f32 %v651_v30 }
  0x9a   : > { %1007 = vperm.xlu1 %2801, %v769_v36   ;;  %v3208_v29 = vpop.permute.xlu2 %852  ;;  %v2723_v36 = vld [vmem:[%s3618_s4 + $0x38] sm:$0xff] }
  0x9c   : > { %v2840_v34 = vpop.eup %2839  ;;  %v3196_v24 = vpop.permute.xlu1 %867 }
  0x9d   : > { %v653_v37 = vmul.f32 %v2840_v34, %v651_v30  ;;  %vm659_vm0 = vweird.f32 %v2840_v34 }
  0x9e   : > { %vm660_vm2 = vmor %vm658_vm1, %vm659_vm0 }
  0x9f   : > { %v654_v39 = vmul.f32 %v2840_v34, %v653_v37 }
  0xa1   : > { %v655_v40 = vmul.f32 0.5, %v654_v39  ;;  %v2724_v39 = vld [vmem:[%s3618_s4 + $0x40] sm:$0xff] }
  0xa2   : > { %982 = vperm.xlu1 %2801, %v764_v43   ;;  %v3213_v32 = vpop.permute.xlu2 %837  ;;  %v793_v6 = vpop.permute.xlu0 %792 }
  0xa3   : > { %v656_v41 = vsub.f32 1.5, %v655_v40 }
  0xa4   : > { %v3203_v27 = vpop.permute.xlu1 %832 }
  0xa5   : > { %v657_v44 = vmul.f32 %v2840_v34, %v656_v41 }
  0xa7   : > { %v661_v47 = vsel %vm660_vm2, %v2840_v34, %v657_v44 }
  0xa8   : > { %v662_v48 = vmul.f32 %v661_v47, %v650_v45 }
  0xaa   : > { %v667_v51 = vmul.f32 %v2830_v46, %v662_v48  ;;  %992 = vperm.xlu1 %2801, %v766_v54   ;;  %v3217_v34 = vpop.permute.xlu2 %842  ;;  %v2725_v48 = vld [vmem:[%s3618_s4 + $0x48] sm:$0xff] }
  0xac   : > { %v3097_v52 = vadd.f32 %v2831_v49, %v667_v51  ;;  %v803_v30 = vpop.permute.xlu1 %802 }
  0xae   : > { %v721_v55 = vpack.c.bf16 %v3097_v52, %v3097_v52 }
  0xb0   : > { %1161 = vmatpush.bf16.xpose.msra.mxu0 %v721_v55  ;;  %2788 = vmatpush.bf16.xpose.msra.mxu1 %v721_v55 }
  0xb1   : > { %2789 = vmatpush.bf16.xpose.msra.mxu2 %v721_v55  ;;  %2790 = vmatpush.bf16.xpose.msra.mxu3 %v721_v55 }
  0xb2   : > { %952 = vperm.xlu1 %2801, %v758_v62   ;;  %v3222_v37 = vpop.permute.xlu2 %882 }
  0xb4   : > { %v3215_v33 = vpop.permute.xlu1 %857 }
  0xb7   : > { %1162 = vmatmul.bf16.vlgmr.msra.gmra.mxu0 %v2716_v57  ;;  %1222 = vmatmul.bf16.vlgmr.msra.gmra.mxu1 %v2728_v58 }
  0xb8   : > { %1242 = vmatmul.bf16.vlgmr.msra.gmra.mxu2 %v2732_v59  ;;  %1252 = vmatmul.bf16.vlgmr.msra.gmra.mxu3 %v2734_v60 }
  0xba   : > { %v908_v40 = vpop.permute.xlu2 %907 }
  0xbc   : > { %v808_v35 = vpop.permute.xlu1 %807 }
  0xc2   : > { %v3229_v46 = vpop.permute.xlu2 %922 }
  0xc4   : > { %v3224_v38 = vpop.permute.xlu1 %847 }
  0xc7   : > { %1167 = vmatmul.bf16.gmra.mxu0 %v2717_v2  ;;  %1227 = vmatmul.bf16.gmra.mxu1 %v2729_v3 }
  0xc8   : > { %1247 = vmatmul.bf16.gmra.mxu2 %v2733_v4  ;;  %1257 = vmatmul.bf16.gmra.mxu3 %v2735_v5  ;;  %v2726_v4 = vld [vmem:[%s3618_s4 + $0x50] sm:$0xff] }
  0xca   : > { %v898_v51 = vpop.permute.xlu2 %897 }
  0xcc   : > { %v903_v43 = vpop.permute.xlu1 %902 }
  0xd4   : > { %v3231_v47 = vpop.permute.xlu1 %877 }
  0xd7   : > { %1172 = vmatmul.bf16.gmra.mxu0 %v2718_v9  ;;  %1232 = vmatmul.bf16.gmra.mxu1 %v2730_v10 }
  0xd8   : > { %1262 = vmatmul.bf16.gmra.mxu3 %v2736_v11 }
  0xdc   : > { %v893_v54 = vpop.permute.xlu1 %892 }
  0xe7   : > { %1177 = vmatmul.bf16.gmra.mxu0 %v2719_v14  ;;  %1237 = vmatmul.bf16.gmra.mxu1 %v2731_v15 }
  0xe8   : > { %1267 = vmatmul.bf16.gmra.mxu3 %v2737_v17 }
  0xf7   : > { %1182 = vmatmul.bf16.gmra.mxu0 %v2720_v21 }
  0xf8   : > { %1272 = vmatmul.bf16.gmra.mxu3 %v2738_v22  ;;  %v2727_v22 = vld [vmem:[%s3618_s4 + $0x58] sm:$0xff] }
 0x107   : > { %1187 = vmatmul.bf16.gmra.mxu0 %v2721_v26 }
 0x108   : > { %1277 = vmatmul.bf16.gmra.mxu3 %v2739_v28 }
 0x117   : > { %1192 = vmatmul.bf16.gmra.mxu0 %v2722_v31 }
 0x127   : > { %1197 = vmatmul.bf16.gmra.mxu0 %v2723_v36 }
 0x134   : > { %v1163_v41 = vpop.f32.mrf.mxu0  ;;  %v1223_v42 = vpop.f32.mrf.mxu1 }
 0x135   : > { %v1224_v55 = vadd.f32 %v1223_v42, %v893_v54  ;;  %v1164_v8 = vadd.f32 %v1163_v41, %v3169_v13 }
 0x137   : > { %1202 = vmatmul.bf16.gmra.mxu0 %v2724_v39  ;;  %v1291_v61 = vpack.c.bf16 %v1224_v55, %v1224_v55 }
 0x139   : > { %v1508_v2 = vunpack.c.l.b16 %v1291_v61 }
 0x13c   : > { %v1165_v44 = vpop.f32.mrf.mxu0  ;;  %v1225_v45 = vpop.f32.mrf.mxu1 }
 0x13d   : > { %v1226_v56 = vadd.f32 %v1225_v45, %v898_v51  ;;  %v1166_v15 = vadd.f32 %v1165_v44, %v3182_v18 }
 0x13f   : > { %v1292_v63 = vpack.c.bf16 %v1226_v56, %v1226_v56 }
 0x141   : > { %v1509_v3 = vunpack.c.l.b16 %v1292_v63 }
 0x143   : > { %v1512_v11 = vpack.c.b16 %v1509_v3, %v1508_v2 }
 0x144   : > { %v1168_v49 = vpop.f32.mrf.mxu0  ;;  %v1228_v50 = vpop.f32.mrf.mxu1 }
 0x145   : > { %v1229_v53 = vadd.f32 %v1228_v50, %v903_v43  ;;  %v1169_v13 = vadd.f32 %v1168_v49, %v3167_v12 }
 0x147   : > { %1207 = vmatmul.bf16.gmra.mxu0 %v2725_v48  ;;  %v1293_v59 = vpack.c.bf16 %v1229_v53, %v1229_v53 }
 0x149   : > { %v1510_v0 = vunpack.c.l.b16 %v1293_v59 }
 0x14c   : > { %v1170_v57 = vpop.f32.mrf.mxu0  ;;  %v1230_v58 = vpop.f32.mrf.mxu1 }
 0x14d   : > { %v1231_v60 = vadd.f32 %v1230_v58, %v908_v40  ;;  %v1171_v39 = vadd.f32 %v1170_v57, %v3177_v16 }
 0x14f   : > { %v1294_v62 = vpack.c.bf16 %v1231_v60, %v1231_v60 }
 0x151   : > { %v1511_v1 = vunpack.c.l.b16 %v1294_v62 }
 0x153   : > { %v1513_v5 = vpack.c.b16 %v1511_v1, %v1510_v0 }
 0x154   : > { %v1173_v7 = vpop.f32.mrf.mxu0 }
 0x155   : > { %v1174_v9 = vadd.f32 %v1173_v7, %v793_v6  ;;  %1525 = vmatpush.bf16.msrb.mxu3 %v1513_v5 }
 0x157   : > { %v2804_v10 = vpack.i.bf16 %v1174_v9, %v1164_v8  ;;  %1212 = vmatmul.bf16.gmra.mxu0 %v2726_v4 }
 0x159   : > { %2805 = vxpose.xlu2.b32.start [1/4] (short) (narrow) %v2804_v10, 8  ;;  %1526 = vmatpush.bf16.msrb.mxu3 %v1512_v11  ;;  %v918_v10 = vpop.permute.xlu1 %917 }
 0x15c   : > { %v1175_v14 = vpop.f32.mrf.mxu0 }
 0x15d   : > { %v1176_v17 = vadd.f32 %v1175_v14, %v3194_v23 }
 0x15f   : > { %v2806_v21 = vpack.i.bf16 %v1176_v17, %v1166_v15 }
 0x161   : > { %2807 = vxpose.xlu2.b32.cont [2/4] (short) (narrow) %v2806_v21, 8 }
 0x164   : > { %v1178_v26 = vpop.f32.mrf.mxu0 }
 0x165   : > { %v1179_v28 = vadd.f32 %v1178_v26, %v803_v30  ;;  %v823_v30 = vpop.permute.xlu0 %822 }
 0x167   : > { %v2808_v31 = vpack.i.bf16 %v1179_v28, %v1169_v13  ;;  %1217 = vmatmul.bf16.gmra.mxu0 %v2727_v22 }
 0x169   : > { %2809 = vxpose.xlu2.b32.cont [3/4] (short) (narrow) %v2808_v31, 8 }
 0x16c   : > { %v1180_v36 = vpop.f32.mrf.mxu0 }
 0x16d   : > { %v1181_v40 = vadd.f32 %v1180_v36, %v808_v35  ;;  %v828_v53 = vpop.permute.xlu0 %827 }
 0x16f   : > { %v2810_v18 = vpack.i.bf16 %v1181_v40, %v1171_v39 }
 0x171   : > { %2811 = vxpose.xlu2.b32.end [4/4] (short) (narrow) %v2810_v18, 8  ;;  %v760_v18 = vld [vmem:[%s3592_s5 + $0x130] sm:$0xff] }
 0x174   : > { %v1183_v23 = vpop.f32.mrf.mxu0 }
 0x175   : > { %v1184_v45 = vadd.f32 %v1183_v23, %v3186_v20  ;;  %v1233_v20 = vpop.f32.mrf.mxu1  ;;  %v888_v59 = vpop.permute.xlu0 %887 }
 0x17c   : > { %v1185_v41 = vpop.f32.mrf.mxu0 }
 0x17d   : > { %v1186_v50 = vadd.f32 %v1185_v41, %v3198_v25  ;;  %v1235_v61 = vpop.f32.mrf.mxu1 }
 0x17e   : > { %v1236_v15 = vadd.f32 %v1235_v61, %v918_v10  ;;  %v3272_v61 = vpop.f32.mrf.mxu3 }
 0x180   : > { %v1296_v31 = vpack.c.bf16 %v1236_v15, %v1236_v15  ;;  %v948_v15 = vpop.permute.xlu1 %947 }
 0x182   : > { %v1537_v23 = vunpack.c.l.b16 %v1296_v31 }
 0x184   : > { %v1188_v42 = vpop.f32.mrf.mxu0 }
 0x185   : > { %v1189_v54 = vadd.f32 %v1188_v42, %v823_v30  ;;  %v1238_v63 = vpop.f32.mrf.mxu1 }
 0x186   : > { %v1239_v9 = vadd.f32 %v1238_v63, %v3229_v46  ;;  %v765_v63 = vld [vmem:[%s3592_s5 + $0x158] sm:$0xff] }
 0x18c   : > { %v1190_v43 = vpop.f32.mrf.mxu0 }
 0x18d   : > { %v1240_v2 = vpop.f32.mrf.mxu1 }
 0x194   : > { %v1193_v44 = vpop.f32.mrf.mxu0 }
 0x195   : > { %v1194_v48 = vadd.f32 %v1193_v44, %v3203_v27  ;;  %v1191_v27 = vadd.f32 %v1190_v43, %v828_v53 }
 0x197   : > { %v2817_v12 = vpack.i.bf16 %v1194_v48, %v1184_v45 }
 0x199   : > { %2818 = vxpose.xlu0.b32.start [1/4] (short) (narrow) %v2817_v12, 8 }
 0x19c   : > { %v1195_v49 = vpop.f32.mrf.mxu0 }
 0x19d   : > { %v1196_v16 = vadd.f32 %v1195_v49, %v3213_v32  ;;  %v873_v32 = vpop.permute.xlu0 %872 }
 0x19f   : > { %v2819_v35 = vpack.i.bf16 %v1196_v16, %v1186_v50 }
 0x1a1   : > { %2820 = vxpose.xlu0.b32.cont [2/4] (short) (narrow) %v2819_v35, 8 }
 0x1a4   : > { %v1198_v51 = vpop.f32.mrf.mxu0 }
 0x1a5   : > { %v1199_v55 = vadd.f32 %v1198_v51, %v3217_v34  ;;  %v928_v0 = vpop.permute.xlu0 %927 }
 0x1a6   : > { %v1241_v4 = vadd.f32 %v1240_v2, %v928_v0  ;;  %v767_v0 = vld [vmem:[%s3592_s5 + $0x168] sm:$0xff]  ;;  %v762_v2 = vld [vmem:[%s3592_s5 + $0x140] sm:$0xff] }
 0x1a7   : > { %v2821_v56 = vpack.i.bf16 %v1199_v55, %v1189_v54 }
 0x1a8   : > { %v1298_v21 = vpack.c.bf16 %v1241_v4, %v1241_v4 }
 0x1a9   : > { %2822 = vxpose.xlu0.b32.cont [3/4] (short) (narrow) %v2821_v56, 8 }
 0x1ac   : > { %v1200_v57 = vpop.f32.mrf.mxu0 }
 0x1ad   : > { %v1201_v58 = vadd.f32 %v1200_v57, %v3224_v38  ;;  %v913_v6 = vpop.permute.xlu0 %912 }
 0x1ae   : > { %v1234_v17 = vadd.f32 %v1233_v20, %v913_v6 }
 0x1af   : > { %v2823_v60 = vpack.i.bf16 %v1201_v58, %v1191_v27 }
 0x1b0   : > { %v1295_v36 = vpack.c.bf16 %v1234_v17, %v1234_v17 }
 0x1b1   : > { %2824 = vxpose.xlu0.b32.end [4/4] (short) (narrow) %v2823_v60, 8 }
 0x1b2   : > { %v1536_v41 = vunpack.c.l.b16 %v1295_v36 }
 0x1b4   : > { %v1203_v25 = vpop.f32.mrf.mxu0  ;;  %v1540_v43 = vpack.c.b16 %v1537_v23, %v1536_v41 }
 0x1b5   : > { %v1204_v38 = vadd.f32 %v1203_v25, %v3208_v29  ;;  %v1539_v29 = vunpack.c.l.b16 %v1298_v21  ;;  %v756_v25 = vld [vmem:[%s3592_s5 + $0x110] sm:$0xff] }
 0x1b7   : > { %v1283_v22 = vpack.c.bf16 %v1204_v38, %v1204_v38 }
 0x1b9   : > { %v1451_v40 = vunpack.c.l.b16 %v1283_v22  ;;  %v933_v22 = vpop.permute.xlu1 %932 }
 0x1bc   : > { %v1205_v62 = vpop.f32.mrf.mxu0 }
 0x1bd   : > { %v1206_v3 = vadd.f32 %v1205_v62, %v3215_v33  ;;  %v1297_v33 = vpack.c.bf16 %v1239_v9, %v1239_v9  ;;  %v3277_v62 = vpop.f32.mrf.mxu3  ;;  %v1243_v9 = vpop.f32.mrf.mxu2 }
 0x1bf   : > { %v1284_v11 = vpack.c.bf16 %v1206_v3, %v1206_v3 }
 0x1c1   : > { %v1452_v13 = vunpack.c.l.b16 %v1284_v11 }
 0x1c3   : > { %v1455_v46 = vpack.c.b16 %v1452_v13, %v1451_v40 }
 0x1c4   : > { %v1208_v1 = vpop.f32.mrf.mxu0 }
 0x1c5   : > { %v1209_v34 = vadd.f32 %v1208_v1, %v3184_v19  ;;  %v1258_v1 = vpop.f32.mrf.mxu3  ;;  %v1245_v11 = vpop.f32.mrf.mxu2 }
 0x1c7   : > { %v1285_v7 = vpack.c.bf16 %v1209_v34, %v1209_v34 }
 0x1c9   : > { %v1453_v19 = vunpack.c.l.b16 %v1285_v7 }
 0x1cc   : > { %v1210_v5 = vpop.f32.mrf.mxu0 }
 0x1cd   : > { %v1211_v8 = vadd.f32 %v1210_v5, %v3196_v24  ;;  %v1538_v24 = vunpack.c.l.b16 %v1297_v33  ;;  %v1260_v5 = vpop.f32.mrf.mxu3  ;;  %v1248_v17 = vpop.f32.mrf.mxu2 }
 0x1cf   : > { %v1286_v14 = vpack.c.bf16 %v1211_v8, %v1211_v8  ;;  %v1541_v42 = vpack.c.b16 %v1539_v29, %v1538_v24 }
 0x1d1   : > { %v1454_v26 = vunpack.c.l.b16 %v1286_v14 }
 0x1d3   : > { %v1456_v28 = vpack.c.b16 %v1454_v26, %v1453_v19  ;;  %v3301_v19 = vld [vmem:[%s635_s0] ss:$0 sm:$0xff] }
 0x1d4   : > { %v1213_v39 = vpop.f32.mrf.mxu0 }
 0x1d5   : > { %1469 = vmatpush.bf16.msrb.mxu1 %v1456_v28  ;;  %v1214_v50 = vadd.f32 %v1213_v39, %v873_v32  ;;  %v761_v32 = vld [vmem:[%s3592_s5 + $0x138] sm:$0xff]  ;;  %v3290_v7 = vpop.f32.mrf.mxu3  ;;  %v1250_v28 = vpop.f32.mrf.mxu2 }
 0x1d6   : > { %v938_v39 = vpop.permute.xlu1 %937  ;;  %v1251_v23 = vadd.f32 %v1250_v28, %v948_v15 }
 0x1d7   : > { %v1287_v54 = vpack.c.bf16 %v1214_v50, %v1214_v50 }
 0x1d9   : > { %1470 = vmatpush.bf16.msrb.mxu1 %v1455_v46 }
 0x1da   : > { %962 = vperm.xlu2 %2802, %v760_v18  }
 0x1dc   : > { %v1215_v44 = vpop.f32.mrf.mxu0 }
 0x1dd   : > { %1553 = vmatpush.bf16.msra.mxu1 %v1541_v42  ;;  %v1216_v12 = vadd.f32 %v1215_v44, %v3231_v47  ;;  %v3292_v8 = vpop.f32.mrf.mxu3 }
 0x1de   : > { %v1003_v46 = vpop.permute.xlu1 %1002 }
 0x1df   : > { %v1288_v51 = vpack.c.bf16 %v1216_v12, %v1216_v12 }
 0x1e1   : > { %1554 = vmatpush.bf16.msra.mxu1 %v1540_v43  ;;  %v1481_v57 = vunpack.c.l.b16 %v1288_v51  ;;  %v1244_v43 = vadd.f32 %v1243_v9, %v933_v22 }
 0x1e4   : > { %v1218_v45 = vpop.f32.mrf.mxu0 }
 0x1e5   : > { %v1219_v48 = vadd.f32 %v1218_v45, %v3222_v37  ;;  %v1480_v37 = vunpack.c.l.b16 %v1287_v54  ;;  %v1268_v10 = vpop.f32.mrf.mxu3  ;;  %v1246_v45 = vadd.f32 %v1245_v11, %v938_v39 }
 0x1e6   : > { %v1008_v42 = vpop.permute.xlu1 %1007 }
 0x1e7   : > { %v1289_v16 = vpack.c.bf16 %v1219_v48, %v1219_v48  ;;  %v1484_v47 = vpack.c.b16 %v1481_v57, %v1480_v37  ;;  %v1302_v48 = vpack.c.bf16 %v1251_v23, %v1251_v23  ;;  %v1300_v51 = vpack.c.bf16 %v1246_v45, %v1246_v45 }
 0x1e9   : > { %v1482_v55 = vunpack.c.l.b16 %v1289_v16  ;;  %v1299_v16 = vpack.c.bf16 %v1244_v43, %v1244_v43 }
 0x1eb   : > { %v1625_v57 = vunpack.c.l.b16 %v1299_v16 }
 0x1ec   : > { %v1220_v30 = vpop.f32.mrf.mxu0 }
 0x1ed   : > { %v1221_v49 = vadd.f32 %v1220_v30, %v888_v59  ;;  %v1270_v14 = vpop.f32.mrf.mxu3 }
 0x1ef   : > { %v1290_v35 = vpack.c.bf16 %v1221_v49, %v1221_v49 }
 0x1f1   : > { %v1483_v53 = vunpack.c.l.b16 %v1290_v35 }
 0x1f2   : > { %v2812_v56 = vpop.trf.xlu2 }
 0x1f3   : > { %v2813_v20 = vunpack.i.l.bf16 %v2812_v56  ;;  %v1485_v27 = vpack.c.b16 %v1483_v53, %v1482_v55  ;;  %v2816_v58 = vunpack.i.h.bf16 %v2812_v56  ;;  %v1628_v53 = vunpack.c.l.b16 %v1302_v48 }
 0x1f5   : > { %v1443_v60 = vpack.c.bf16 %v2813_v20, %v2813_v20  ;;  %1497 = vmatpush.bf16.msrb.mxu2 %v1485_v27  ;;  %v1444_v59 = vpack.c.bf16 %v2816_v58, %v2816_v58  ;;  %v3294_v21 = vpop.f32.mrf.mxu3 }
 0x1f7   : > { %2510 = vmatmul.msk.bf16.vlgmr.msrb.gmra.mxu1 %vm1459_vm3, %v1443_v60  ;;  %v1626_v60 = vunpack.c.l.b16 %v1300_v51 }
 0x1f9   : > { %1498 = vmatpush.bf16.msrb.mxu2 %v1484_v47 }
 0x1fc   : > { %2511 = vmatmul.msk.bf16.vlgmr.msrb.gmra.mxu2 %vm1459_vm3, %v1444_v59 }
 0x1fd   : > { %v1275_v36 = vpop.f32.mrf.mxu3 }
 0x205   : > { %v1278_v24 = vpop.f32.mrf.mxu3 }
 0x206   : > { %v1279_v35 = vadd.f32 %v1278_v24, %v1003_v46 }
 0x208   : > { %v1313_v27 = vpack.c.bf16 %v1279_v35, %v1279_v35 }
 0x20d   : > { %v1280_v41 = vpop.f32.mrf.mxu3 }
 0x20e   : > { %v1281_v30 = vadd.f32 %v1280_v41, %v1008_v42 }
 0x210   : > { %v1314_v56 = vpack.c.bf16 %v1281_v30, %v1281_v30 }
 0x21f   : > { %942 = vperm.xlu0 %2803, %v756_v25   ;;  %v983_v25 = vpop.permute.xlu1 %982 }
 0x227   : > { %967 = vperm.xlu0 %2803, %v761_v32   ;;  %v1724_v32 = vunpack.c.l.b16 %v1314_v56 }
 0x22f   : > { %987 = vperm.xlu0 %2803, %v765_v63  }
 0x234   : > { %v963_v49 = vpop.permute.xlu2 %962 }
 0x235   : > { %v1259_v54 = vadd.f32 %v1258_v1, %v963_v49 }
 0x237   : > { %997 = vperm.xlu0 %2803, %v767_v0   ;;  %v1305_v37 = vpack.c.bf16 %v1259_v54, %v1259_v54  ;;  %v1723_v0 = vunpack.c.l.b16 %v1313_v27 }
 0x23d   : > { %v2825_v34 = vpop.trf.xlu0 }
 0x23e   : > { %v2829_v3 = vunpack.i.h.bf16 %v2825_v34  ;;  %v2826_v4 = vunpack.i.l.bf16 %v2825_v34  ;;  %v1269_v34 = vadd.f32 %v1268_v10, %v983_v25 }
 0x23f   : > { %972 = vperm.xlu0 %2803, %v762_v2   ;;  %v1629_v2 = vpack.c.b16 %v1626_v60, %v1625_v57  ;;  %v763_v57 = vld [vmem:[%s3592_s5 + $0x148] sm:$0xff] }
 0x240   : > { %v1446_v6 = vpack.c.bf16 %v2829_v3, %v2829_v3  ;;  %v1445_v38 = vpack.c.bf16 %v2826_v4, %v2826_v4  ;;  %v1659_v3 = vunpack.c.l.b16 %v1305_v37  ;;  %v1726_v4 = vpack.c.b16 %v1724_v32, %v1723_v0 }
 0x241   : > { %v1309_v9 = vpack.c.bf16 %v1269_v34, %v1269_v34  ;;  %v1635_v15 = vsel %vm1572_vm4, %v1629_v2, 0 }
 0x242   : > { %2512 = vmatmul.msk.bf16.vlgmr.msrb.gmra.mxu3 %vm1459_vm3, %v1445_v38  ;;  %2513 = vmatmul.msk.bf16.vlgmr.msra.gmra.mxu1 %vm1459_vm3, %v1446_v6 }
 0x274   : > { %v1472_v26 = vpop.f32.mrf.mxu1 }
 0x275   : > { %v1560_v33 = vmul.f32 0.17677669, %v1472_v26  ;;  %v993_v26 = vpop.permute.xlu1 %992 }
 0x276   : > { %v1274_v10 = vadd.f32 %v3294_v21, %v993_v26 }
 0x277   : > { %v3304_v13 = vadd.f32 %v3301_v19, %v1560_v33  ;;  %v1691_v33 = vunpack.c.l.b16 %v1309_v9 }
 0x278   : > { %v1311_v39 = vpack.c.bf16 %v1274_v10, %v1274_v10 }
 0x279   : > { %v1573_v31 = vsel %vm1572_vm4, %v3304_v13, -inf }
 0x27a   : > { %1574 = vmax.xlane.f32.xlu1 %v1573_v31 }
 0x27c   : > { %v1474_v29 = vpop.f32.mrf.mxu1 }
 0x27f   : > { %v3308_v40 = vpop.f32.mrf.mxu2 }
 0x280   : > { %v1561_v21 = vmul.f32 0.17677669, %v3308_v40  ;;  %v759_v40 = vld [vmem:[%s3592_s5 + $0x128] sm:$0xff] }
 0x287   : > { %v1502_v18 = vpop.f32.mrf.mxu2 }
 0x288   : > { %v1721_v18 = vunpack.c.l.b16 %v1311_v39 }
 0x291   : > { %v943_v44 = vpop.permute.xlu0 %942 }
 0x292   : > { %v1249_v12 = vadd.f32 %v1248_v17, %v943_v44  ;;  %v1734_v17 = vsel %vm1572_vm4, %v1726_v4, 0 }
 0x294   : > { %v1301_v50 = vpack.c.bf16 %v1249_v12, %v1249_v12 }
 0x296   : > { %v1627_v55 = vunpack.c.l.b16 %v1301_v50  ;;  %v1569_v50 = vadd.f32 %v3301_v19, %v1561_v21 }
 0x298   : > { %v1630_v20 = vpack.c.b16 %v1628_v53, %v1627_v55  ;;  %v1576_v35 = vsel %vm1572_vm4, %v1569_v50, -inf  ;;  %v953_v53 = vpop.permute.xlu1 %952 }
 0x299   : > { %v968_v58 = vpop.permute.xlu0 %967 }
 0x29a   : > { %v1261_v47 = vadd.f32 %v1260_v5, %v968_v58  ;;  %v1638_v59 = vsel %vm1572_vm4, %v1630_v20, 0 }
 0x29b   : > { %1646 = vmatpush.bf16.xpose.msra.mxu2 %v1638_v59 }
 0x29c   : > { %v1306_v63 = vpack.c.bf16 %v1261_v47, %v1261_v47 }
 0x29e   : > { %v1660_v1 = vunpack.c.l.b16 %v1306_v63  ;;  %v1254_v63 = vadd.f32 %v3272_v61, %v953_v53 }
 0x2a0   : > { %v1662_v6 = vpack.c.b16 %v1660_v1, %v1659_v3  ;;  %v1303_v3 = vpack.c.bf16 %v1254_v63, %v1254_v63 }
 0x2a1   : > { %v988_v38 = vpop.permute.xlu0 %987 }
 0x2a2   : > { %v1271_v11 = vadd.f32 %v1270_v14, %v988_v38  ;;  %v1670_v5 = vsel %vm1572_vm4, %v1662_v6, 0 }
 0x2a3   : > { %1647 = vmatpush.bf16.xpose.msra.mxu2 %v1635_v15  ;;  %1678 = vmatpush.bf16.xpose.msra.mxu3 %v1670_v5 }
 0x2a4   : > { %v1310_v22 = vpack.c.bf16 %v1271_v11, %v1271_v11  ;;  %v1657_v11 = vunpack.c.l.b16 %v1303_v3 }
 0x2a6   : > { %v1692_v28 = vunpack.c.l.b16 %v1310_v22 }
 0x2a8   : > { %v1694_v31 = vpack.c.b16 %v1692_v28, %v1691_v33 }
 0x2a9   : > { %v998_v29 = vpop.permute.xlu0 %997 }
 0x2aa   : > { %v1276_v24 = vadd.f32 %v1275_v36, %v998_v29  ;;  %v1702_v14 = vsel %vm1572_vm4, %v1694_v31, 0 }
 0x2ab   : > { %1742 = vmatpush.bf16.xpose.msrb.mxu2 %v1734_v17  ;;  %1710 = vmatpush.bf16.xpose.msrb.mxu1 %v1702_v14 }
 0x2ac   : > { %v1312_v46 = vpack.c.bf16 %v1276_v24, %v1276_v24 }
 0x2ae   : > { %v1722_v23 = vunpack.c.l.b16 %v1312_v46 }
 0x2b0   : > { %v1725_v41 = vpack.c.b16 %v1722_v23, %v1721_v18 }
 0x2b1   : > { %v973_v10 = vpop.permute.xlu0 %972 }
 0x2b2   : > { %v1731_v42 = vsel %vm1572_vm4, %v1725_v41, 0  ;;  %v1264_v28 = vadd.f32 %v3290_v7, %v973_v10  ;;  %v2741_v41 = vld [vmem:[%s3593_s6 + $0x8] sm:$0xff] }
 0x2b3   : > { %1743 = vmatpush.bf16.xpose.msrb.mxu2 %v1731_v42  ;;  %v2761_v10 = vld [vmem:[%s3597_s10 + $0x64] sm:$0xf0] }
 0x2b4   : > { %v1307_v29 = vpack.c.bf16 %v1264_v28, %v1264_v28  ;;  %v2760_v28 = vld [vmem:[%s3597_s10 + $0x64] sm:$0xf] }
 0x2b6   : > { %v1689_v14 = vunpack.c.l.b16 %v1307_v29  ;;  %v2606_v29 = vld [vmem:[%s3597_s10 + $0x68] sm:$0xf0] }
 0x2bf   : > { %v1556_v43 = vpop.f32.mrf.mxu1 }
 0x2c0   : > { %v1563_v44 = vmul.f32 0.17677669, %v1556_v43 }
 0x2c2   : > { %v1571_v45 = vadd.f32 %v3301_v19, %v1563_v44 }
 0x2c4   : > { %v1582_v48 = vsel %vm1572_vm4, %v1571_v45, -inf }
 0x2c5   : > { %1583 = vmax.xlane.f32.xlu1 %v1582_v48  ;;  %v1528_v36 = vpop.f32.mrf.mxu3 }
 0x2c6   : > { %v1562_v12 = vmul.f32 0.17677669, %v1528_v36 }
 0x2c7   : > { %v1558_v30 = vpop.f32.mrf.mxu1 }
 0x2c8   : > { %v1570_v49 = vadd.f32 %v3301_v19, %v1562_v12 }
 0x2ca   : > { %v1579_v16 = vsel %vm1572_vm4, %v1570_v49, -inf }
 0x2cb   : > { %1580 = vmax.xlane.f32.xlu2 %v1579_v16  ;;  %v2745_v16 = vld [vmem:[%s3593_s6 + $0x28] sm:$0xff] }
 0x2cd   : > { %1577 = vmax.xlane.f32.xlu1 %v1576_v35  ;;  %v1530_v51 = vpop.f32.mrf.mxu3  ;;  %v2747_v35 = vld [vmem:[%s3593_s6 + $0x38] sm:$0xff] }
 0x2e3   : > { %957 = vperm.xlu2 %2802, %v759_v40  }
 0x2ed   : > { %v1575_v54 = vpop.xlane.xlu1 %1574 }
 0x2ee   : > { %v1585_v55 = vsub.f32 %v3304_v13, %v1575_v54  ;;  %v2744_v54 = vld [vmem:[%s3593_s6 + $0x20] sm:$0xff] }
 0x2f0   : > { %v1589_v56 = vmul.f32 1.442695, %v1585_v55  ;;  %v2746_v55 = vld [vmem:[%s3593_s6 + $0x30] sm:$0xff] }
 0x2f2   : > { %2841 = vpow2.f32 %v1589_v56  ;;  %v2743_v56 = vld [vmem:[%s3593_s6 + $0x18] sm:$0xff] }
 0x2f8   : > { %v2842_v20 = vpop.eup %2841 }
 0x2f9   : > { %v1597_v19 = vsel %vm1572_vm4, %v2842_v20, 0.0 }
 0x2fa   : > { %1598 = vadd.xlane.f32.xlu1 %v1597_v19 }
 0x313   : > { %977 = vperm.xlu1 %2801, %v763_v57  }
 0x338   : > { %v1584_v27 = vpop.xlane.xlu1 %1583 }
 0x339   : > { %v1588_v58 = vsub.f32 %v1571_v45, %v1584_v27 }
 0x33b   : > { %v1595_v60 = vmul.f32 1.442695, %v1588_v58 }
 0x33d   : > { %2843 = vpow2.f32 %v1595_v60 }
 0x33e   : > { %v1581_v37 = vpop.xlane.xlu2 %1580 }
 0x33f   : > { %v1587_v47 = vsub.f32 %v1570_v49, %v1581_v37 }
 0x340   : > { %v1578_v59 = vpop.xlane.xlu1 %1577 }
 0x341   : > { %v1593_v25 = vmul.f32 1.442695, %v1587_v47  ;;  %v1586_v13 = vsub.f32 %v1569_v50, %v1578_v59  ;;  %v2740_v50 = vld [vmem:[%s3593_s6] sm:$0xff] }
 0x343   : > { %v2844_v32 = vpop.eup %2843  ;;  %2845 = vpow2.f32 %v1593_v25  ;;  %v1591_v0 = vmul.f32 1.442695, %v1586_v13 }
 0x344   : > { %v1606_v2 = vsel %vm1572_vm4, %v2844_v32, 0.0 }
 0x345   : > { %2847 = vpow2.f32 %v1591_v0  ;;  %1607 = vadd.xlane.f32.xlu2 %v1606_v2 }
 0x346   : > { %v958_v34 = vpop.permute.xlu2 %957 }
 0x347   : > { %v1256_v1 = vadd.f32 %v3277_v62, %v958_v34 }
 0x349   : > { %v2846_v4 = vpop.eup %2845  ;;  %v1304_v6 = vpack.c.bf16 %v1256_v1, %v1256_v1  ;;  %v2833_v1 = vld [vmem:[%s3594_s7] ss:$0 sm:$0xff] }
 0x34a   : > { %v1603_v38 = vsel %vm1572_vm4, %v2846_v4, 0.0 }
 0x34b   : > { %v2848_v9 = vpop.eup %2847  ;;  %v1658_v15 = vunpack.c.l.b16 %v1304_v6  ;;  %1604 = vadd.xlane.f32.xlu1 %v1603_v38 }
 0x34c   : > { %v1600_v61 = vsel %vm1572_vm4, %v2848_v9, 0.0 }
 0x34d   : > { %v1661_v5 = vpack.c.b16 %v1658_v15, %v1657_v11  ;;  %1601 = vadd.xlane.f32.xlu0 %v1600_v61 }
 0x34f   : > { %v1667_v17 = vsel %vm1572_vm4, %v1661_v5, 0  ;;  %v2612_v5 = vld [vmem:[%s3597_s10 + $0x70] sm:$0xf] }
 0x350   : > { %1679 = vmatpush.bf16.xpose.msra.mxu3 %v1667_v17  ;;  %v2763_v17 = vld [vmem:[%s3597_s10 + $0x74] sm:$0xf0] }
 0x358   : > { %1790 = vmatpush.bf16.msrb.mxu3 %v2741_v41 }
 0x35c   : > { %1791 = vmatpush.bf16.msrb.mxu3 %v2740_v50  ;;  %v2572_v50 = vld [vmem:[%s3597_s10 + $0x20] sm:$0xf] }
 0x36d   : > { %v1599_v22 = vpop.xlane.xlu1 %1598 }
 0x36e   : > { %2849 = vrcp.f32 %v1599_v22  ;;  %v2762_v22 = vld [vmem:[%s3597_s10 + $0x74] sm:$0xf] }
 0x374   : > { %v2850_v26 = vpop.eup %2849 }
 0x375   : > { %v1613_v33 = vmul.f32 %v2850_v26, %v2842_v20  ;;  %v2742_v20 = vld [vmem:[%s3593_s6 + $0x10] sm:$0xff]  ;;  %v2614_v26 = vld [vmem:[%s3597_s10 + $0x78] sm:$0xf0] }
 0x377   : > { %v1617_v62 = vpack.c.bf16 %v1613_v33, %v1613_v33  ;;  %v2617_v33 = vor.u32 %v2762_v22, %v2614_v26 }
 0x379   : > { %2514 = vmatmul.msk.bf16.vlgmr.msra.gmra.mxu2 %vm1572_vm4, %v1617_v62  ;;  %v2604_v62 = vld [vmem:[%s3597_s10 + $0x60] sm:$0xf] }
 0x37a   : > { %1846 = vmatpush.bf16.msra.mxu2 %v2745_v16  ;;  %v2753_v16 = vld [vmem:[%s3597_s10 + $0x24] sm:$0xf0] }
 0x37e   : > { %1847 = vmatpush.bf16.msra.mxu2 %v2744_v54  ;;  %v2564_v54 = vld [vmem:[%s3597_s10 + $0x10] sm:$0xf] }
 0x385   : > { %v978_v31 = vpop.permute.xlu1 %977 }
 0x386   : > { %v1266_v39 = vadd.f32 %v3292_v8, %v978_v31  ;;  %v2605_v31 = vor.u32 %v2761_v10, %v2604_v62  ;;  %v2779_v10 = vld [vmem:[%s3599_s12 + $0x78] sm:$0xff] }
 0x388   : > { %v1308_v24 = vpack.c.bf16 %v1266_v39, %v1266_v39  ;;  %v2609_v39 = vor.u32 %v2760_v28, %v2606_v29  ;;  %v2769_v28 = vld [vmem:[%s3599_s12 + $0x28] sm:$0xff]  ;;  %v2768_v29 = vld [vmem:[%s3599_s12 + $0x20] sm:$0xff] }
 0x38a   : > { %v1690_v46 = vunpack.c.l.b16 %v1308_v24  ;;  %v2596_v24 = vld [vmem:[%s3597_s10 + $0x50] sm:$0xf] }
 0x38c   : > { %v1693_v18 = vpack.c.b16 %v1690_v46, %v1689_v14  ;;  %v2759_v14 = vld [vmem:[%s3597_s10 + $0x54] sm:$0xf0]  ;;  %v2758_v46 = vld [vmem:[%s3597_s10 + $0x54] sm:$0xf] }
 0x38e   : > { %v1699_v23 = vsel %vm1572_vm4, %v1693_v18, 0  ;;  %v2597_v18 = vor.u32 %v2759_v14, %v2596_v24  ;;  %v2767_v24 = vld [vmem:[%s3599_s12 + $0x18] sm:$0xff]  ;;  %v2776_v14 = vld [vmem:[%s3599_s12 + $0x60] sm:$0xff] }
 0x38f   : > { %1711 = vmatpush.bf16.xpose.msrb.mxu1 %v1699_v23  ;;  %v2598_v23 = vld [vmem:[%s3597_s10 + $0x58] sm:$0xf0] }
 0x390   : > { %v2601_v41 = vor.u32 %v2758_v46, %v2598_v23  ;;  %v2766_v46 = vld [vmem:[%s3599_s12 + $0x10] sm:$0xff]  ;;  %v2765_v23 = vld [vmem:[%s3599_s12 + $0x8] sm:$0xff] }
 0x397   : > { %1818 = vmatpush.bf16.msra.mxu1 %v2743_v56  ;;  %v2750_v56 = vld [vmem:[%s3597_s10 + $0x14] sm:$0xf] }
 0x39b   : > { %1819 = vmatpush.bf16.msra.mxu1 %v2742_v20 }
 0x3b8   : > { %v1608_v42 = vpop.xlane.xlu2 %1607 }
 0x3b9   : > { %2851 = vrcp.f32 %v1608_v42  ;;  %v2588_v42 = vld [vmem:[%s3597_s10 + $0x40] sm:$0xf] }
 0x3be   : > { %v1605_v43 = vpop.xlane.xlu1 %1604 }
 0x3bf   : > { %v2852_v7 = vpop.eup %2851  ;;  %2853 = vrcp.f32 %v1605_v43  ;;  %v2757_v43 = vld [vmem:[%s3597_s10 + $0x44] sm:$0xf0] }
 0x3c0   : > { %v1616_v44 = vmul.f32 %v2852_v7, %v2844_v32  ;;  %v1602_v45 = vpop.xlane.xlu0 %1601  ;;  %v2756_v7 = vld [vmem:[%s3597_s10 + $0x44] sm:$0xf] }
 0x3c1   : > { %2855 = vrcp.f32 %v1602_v45  ;;  %v2590_v45 = vld [vmem:[%s3597_s10 + $0x48] sm:$0xf0] }
 0x3c2   : > { %v1620_v8 = vpack.c.bf16 %v1616_v44, %v1616_v44  ;;  %v2589_v44 = vor.u32 %v2757_v43, %v2588_v42  ;;  %v2764_v42 = vld [vmem:[%s3599_s12] sm:$0xff]  ;;  %v2773_v43 = vld [vmem:[%s3599_s12 + $0x48] sm:$0xff] }
 0x3c4   : > { %2517 = vmatmul.msk.bf16.vlgmr.msrb.gmra.mxu2 %vm1572_vm4, %v1620_v8  ;;  %v2593_v8 = vor.u32 %v2756_v7, %v2590_v45  ;;  %v1939_v7 = vld [vmem:[%s3598_s11] sm:$0x3] }
 0x3c5   : > { %v2854_v21 = vpop.eup %2853  ;;  %2038 = vmatpush.bf16.msrb.mxu2 %v2617_v33  ;;  %v1941_v45 = vperm.slane %v1939_v7, 0 }
 0x3c6   : > { %v1615_v48 = vmul.f32 %v2854_v21, %v2846_v4  ;;  %v2580_v21 = vld [vmem:[%s3597_s10 + $0x30] sm:$0xf] }
 0x3c7   : > { %v2856_v36 = vpop.eup %2855 }
 0x3c8   : > { %v1619_v12 = vpack.c.bf16 %v1615_v48, %v1615_v48  ;;  %v1614_v30 = vmul.f32 %v2856_v36, %v2848_v9  ;;  %v2755_v48 = vld [vmem:[%s3597_s10 + $0x34] sm:$0xf0]  ;;  %v2754_v36 = vld [vmem:[%s3597_s10 + $0x34] sm:$0xf] }
 0x3c9   : > { %2039 = vmatpush.bf16.msrb.mxu2 %v2609_v39  ;;  %v2777_v39 = vld [vmem:[%s3599_s12 + $0x68] sm:$0xff] }
 0x3ca   : > { %v1618_v49 = vpack.c.bf16 %v1614_v30, %v1614_v30  ;;  %2516 = vmatmul.msk.bf16.vlgmr.msrb.gmra.mxu1 %vm1572_vm4, %v1619_v12  ;;  %v2581_v12 = vor.u32 %v2755_v48, %v2580_v21  ;;  %v2582_v30 = vld [vmem:[%s3597_s10 + $0x38] sm:$0xf0] }
 0x3cc   : > { %2515 = vmatmul.msk.bf16.vlgmr.msra.gmra.mxu3 %vm1572_vm4, %v1618_v49  ;;  %v2585_v49 = vor.u32 %v2754_v36, %v2582_v30  ;;  %v1942_v36 = vperm.slane %v1939_v7, 1  ;;  %v2838_v7 = vld [vmem:[%s3602_s15] ss:$0 sm:$0xff] }
 0x3cd   : > { %1874 = vmatpush.bf16.msra.mxu3 %v2747_v35  ;;  %2040 = vmatpush.bf16.msrb.mxu2 %v2601_v41  ;;  %v2752_v35 = vld [vmem:[%s3597_s10 + $0x24] sm:$0xf]  ;;  %v2774_v41 = vld [vmem:[%s3599_s12 + $0x50] sm:$0xff] }
 0x3d1   : > { %1875 = vmatpush.bf16.msra.mxu3 %v2746_v55  ;;  %2041 = vmatpush.bf16.msrb.mxu2 %v2593_v8  ;;  %v2751_v55 = vld [vmem:[%s3597_s10 + $0x14] sm:$0xf0] }
 0x3d2   : > { %v2565_v20 = vor.u32 %v2751_v55, %v2564_v54 }
 0x3d5   : > { %2042 = vmatpush.bf16.msrb.mxu2 %v2585_v49 }
 0x3fc   : > { %v1649_v51 = vpop.f32.mrf.mxu2 }
 0x3fd   : > { %v1749_v40 = vpack.c.bf16 %v1649_v51, %v1649_v51  ;;  %v2573_v51 = vor.u32 %v2753_v16, %v2572_v50 }
 0x3ff   : > { %2526 = vmatmul.msk.bf16.vlgmr.msrb.gmra.mxu3 %vm1459_vm3, %v1749_v40  ;;  %v2574_v40 = vld [vmem:[%s3597_s10 + $0x28] sm:$0xf0] }
 0x404   : > { %v1651_v53 = vpop.f32.mrf.mxu2 }
 0x405   : > { %v2577_v53 = vor.u32 %v2752_v35, %v2574_v40 }
 0x407   : > { %2043 = vmatpush.bf16.msrb.mxu2 %v2577_v53 }
 0x447   : > { %v1713_v19 = vpop.f32.mrf.mxu1  ;;  %v1745_v57 = vpop.f32.mrf.mxu2 }
 0x448   : > { %v1751_v27 = vpack.c.bf16 %v1713_v19, %v1713_v19  ;;  %v1752_v58 = vpack.c.bf16 %v1745_v57, %v1745_v57  ;;  %v2566_v19 = vld [vmem:[%s3597_s10 + $0x18] sm:$0xf0]  ;;  %v2556_v57 = vld [vmem:[%s3597_s10] sm:$0xf] }
 0x44a   : > { %2544 = vmatmul.msk.bf16.vlgmr.msra.gmra.mxu2 %vm1459_vm3, %v1751_v27  ;;  %2553 = vmatmul.msk.bf16.vlgmr.msra.gmra.mxu3 %vm1459_vm3, %v1752_v58  ;;  %v2749_v27 = vld [vmem:[%s3597_s10 + $0x4] sm:$0xf0]  ;;  %v2569_v58 = vor.u32 %v2750_v56, %v2566_v19 }
 0x44c   : > { %2044 = vmatpush.bf16.msrb.mxu2 %v2569_v58 }
 0x44f   : > { %v1681_v60 = vpop.f32.mrf.mxu3  ;;  %v1715_v37 = vpop.f32.mrf.mxu1 }
 0x450   : > { %v1750_v47 = vpack.c.bf16 %v1681_v60, %v1681_v60  ;;  %v1747_v59 = vpop.f32.mrf.mxu2  ;;  %v2748_v60 = vld [vmem:[%s3597_s10 + $0x4] sm:$0xf]  ;;  %v2558_v37 = vld [vmem:[%s3597_s10 + $0x8] sm:$0xf0] }
 0x451   : > { %v2561_v59 = vor.u32 %v2748_v60, %v2558_v37 }
 0x452   : > { %2535 = vmatmul.msk.bf16.vlgmr.msra.gmra.mxu1 %vm1459_vm3, %v1750_v47  ;;  %v2557_v47 = vor.u32 %v2749_v27, %v2556_v57 }
 0x453   : > { %2045 = vmatpush.bf16.msrb.mxu2 %v2561_v59 }
 0x457   : > { %v1683_v25 = vpop.f32.mrf.mxu3 }
 0x482   : > { %v1793_v13 = vpop.f32.mrf.mxu3 }
 0x48a   : > { %v1795_v32 = vpop.f32.mrf.mxu3 }
 0x4cd   : > { %v1849_v63 = vpop.f32.mrf.mxu2  ;;  %v1877_v0 = vpop.f32.mrf.mxu3 }
 0x4cf   : > { %v1821_v2 = vpop.f32.mrf.mxu1 }
 0x4d0   : > { %v1881_v34 = vadd.f32 %v1821_v2, %v1793_v13  ;;  %v2771_v2 = vld [vmem:[%s3599_s12 + $0x38] sm:$0xff] }
 0x4d1   : > { %2203 = vmatpush.bf16.msrb.mxu3 %v2771_v2 }
 0x4d2   : > { %v1882_v3 = vadd.f32 %v1881_v34, %v1849_v63 }
 0x4d4   : > { %v1883_v4 = vadd.f32 %v1882_v3, %v1877_v0 }
 0x4d5   : > { %v1851_v6 = vpop.f32.mrf.mxu2  ;;  %v1879_v38 = vpop.f32.mrf.mxu3 }
 0x4d6   : > { %v1888_v9 = vadd.f32 %v2833_v1, %v1883_v4 }
 0x4d7   : > { %v1823_v11 = vpop.f32.mrf.mxu1 }
 0x4d8   : > { %v3377_v15 = vadd.f32 %v1888_v9, %v3097_v52  ;;  %v2613_v52 = vor.u32 %v2763_v17, %v2612_v5  ;;  %v2834_v5 = vld [vmem:[%s3595_s8] ss:$0 sm:$0xff] }
 0x4da   : > { %1890 = vadd.xlane.f32.xlu2 %v3377_v15  ;;  %v1892_v61 = vmul.f32 %v3377_v15, %v3377_v15  ;;  %2025 = vmatpush.bf16.msrb.mxu1 %v2613_v52  ;;  %v2835_v52 = vld [vmem:[%s3596_s9] ss:$0 sm:$0xff] }
 0x4dc   : > { %1893 = vadd.xlane.f32.xlu0 %v1892_v61 }
 0x4de   : > { %2026 = vmatpush.bf16.msrb.mxu1 %v2605_v31  ;;  %v2778_v31 = vld [vmem:[%s3599_s12 + $0x70] sm:$0xff] }
 0x4e2   : > { %2027 = vmatpush.bf16.msrb.mxu1 %v2597_v18  ;;  %v2775_v18 = vld [vmem:[%s3599_s12 + $0x58] sm:$0xff] }
 0x4e6   : > { %2028 = vmatpush.bf16.msrb.mxu1 %v2589_v44  ;;  %v2772_v44 = vld [vmem:[%s3599_s12 + $0x40] sm:$0xff] }
 0x4ea   : > { %2029 = vmatpush.bf16.msrb.mxu1 %v2581_v12 }
 0x4ee   : > { %2030 = vmatpush.bf16.msrb.mxu1 %v2573_v51 }
 0x4f2   : > { %2031 = vmatpush.bf16.msrb.mxu1 %v2565_v20 }
 0x4f6   : > { %2032 = vmatpush.bf16.msrb.mxu1 %v2557_v47 }
 0x4fa   : > { %2216 = vmatpush.bf16.msra.mxu1 %v2779_v10 }
 0x4fe   : > { %2217 = vmatpush.bf16.msra.mxu1 %v2778_v31 }
 0x502   : > { %2218 = vmatpush.bf16.msra.mxu1 %v2777_v39 }
 0x506   : > { %2219 = vmatpush.bf16.msra.mxu1 %v2776_v14 }
 0x50a   : > { %2220 = vmatpush.bf16.msra.mxu1 %v2775_v18 }
 0x50e   : > { %2221 = vmatpush.bf16.msra.mxu1 %v2774_v41  ;;  %v2837_v41 = vld [vmem:[%s3601_s14] ss:$0 sm:$0xff] }
 0x512   : > { %2222 = vmatpush.bf16.msra.mxu1 %v2773_v43 }
 0x516   : > { %2223 = vmatpush.bf16.msra.mxu1 %v2772_v44 }
 0x54d   : > { %v1891_v25 = vpop.xlane.xlu2 %1890 }
 0x54e   : > { %v1895_v13 = vmul.f32 0.0078125, %v1891_v25 }
 0x54f   : > { %v1894_v32 = vpop.xlane.xlu0 %1893 }
 0x550   : > { %v1897_v63 = vmul.f32 %v1895_v13, %v1895_v13  ;;  %v1896_v0 = vmul.f32 0.0078125, %v1894_v32  ;;  %v1899_v61 = vsub.f32 %v3377_v15, %v1895_v13  ;;  %v2770_v15 = vld [vmem:[%s3599_s12 + $0x30] sm:$0xff]  ;;  %v2836_v32 = vld [vmem:[%s3600_s13] ss:$0 sm:$0xff] }
 0x551   : > { %2204 = vmatpush.bf16.msrb.mxu3 %v2770_v15 }
 0x552   : > { %v1898_v34 = vsub.f32 %v1896_v0, %v1897_v63 }
 0x554   : > { %v1900_v3 = vadd.f32 1e-12, %v1898_v34 }
 0x555   : > { %2205 = vmatpush.bf16.msrb.mxu3 %v2769_v28 }
 0x556   : > { %2857 = vrsqrt.f32 %v1900_v3  ;;  %vm1907_vm6 = vweird.f32 %v1900_v3 }
 0x559   : > { %2206 = vmatpush.bf16.msrb.mxu3 %v2768_v29 }
 0x55c   : > { %v2858_v1 = vpop.eup %2857 }
 0x55d   : > { %v1902_v4 = vmul.f32 %v2858_v1, %v1900_v3  ;;  %vm1908_vm5 = vweird.f32 %v2858_v1  ;;  %2207 = vmatpush.bf16.msrb.mxu3 %v2767_v24 }
 0x55e   : > { %vm1909_vm7 = vmor %vm1907_vm6, %vm1908_vm5 }
 0x55f   : > { %v1903_v6 = vmul.f32 %v2858_v1, %v1902_v4 }
 0x561   : > { %v1904_v38 = vmul.f32 0.5, %v1903_v6  ;;  %2208 = vmatpush.bf16.msrb.mxu3 %v2766_v46 }
 0x563   : > { %v1905_v9 = vsub.f32 1.5, %v1904_v38  ;;  %v2787_v38 = vld [vmem:[%s3603_s16 + $0x38] sm:$0xff] }
 0x564   : > { %2328 = vmatpush.bf16.msra.mxu2 %v2787_v38 }
 0x565   : > { %v1906_v11 = vmul.f32 %v2858_v1, %v1905_v9  ;;  %2209 = vmatpush.bf16.msrb.mxu3 %v2765_v23  ;;  %v2786_v9 = vld [vmem:[%s3603_s16 + $0x30] sm:$0xff] }
 0x567   : > { %v1910_v17 = vsel %vm1909_vm7, %v2858_v1, %v1906_v11  ;;  %v2785_v11 = vld [vmem:[%s3603_s16 + $0x28] sm:$0xff] }
 0x568   : > { %v1911_v22 = vmul.f32 %v1910_v17, %v1899_v61  ;;  %2329 = vmatpush.bf16.msra.mxu2 %v2786_v9  ;;  %v2784_v61 = vld [vmem:[%s3603_s16 + $0x20] sm:$0xff]  ;;  %v2782_v17 = vld [vmem:[%s3603_s16 + $0x10] sm:$0xff] }
 0x569   : > { %2210 = vmatpush.bf16.msrb.mxu3 %v2764_v42 }
 0x56a   : > { %v1916_v26 = vmul.f32 %v2834_v5, %v1911_v22  ;;  %v2783_v5 = vld [vmem:[%s3603_s16 + $0x18] sm:$0xff]  ;;  %v2781_v22 = vld [vmem:[%s3603_s16 + $0x8] sm:$0xff] }
 0x56c   : > { %v3488_v33 = vadd.f32 %v2835_v52, %v1916_v26  ;;  %2330 = vmatpush.bf16.msra.mxu2 %v2785_v11  ;;  %v2780_v52 = vld [vmem:[%s3603_s16] sm:$0xff] }
 0x56e   : > { %v1922_v62 = vpack.c.bf16 %v3488_v33, %v3488_v33 }
 0x570   : > { %2033 = vmatmul.bf16.vlgmr.msrb.gmra.mxu1 %v1922_v62  ;;  %2046 = vmatmul.bf16.vlgmr.msrb.gmra.mxu2 %v1922_v62 }
 0x571   : > { %2331 = vmatpush.bf16.msra.mxu2 %v2784_v61 }
 0x575   : > { %2332 = vmatpush.bf16.msra.mxu2 %v2783_v5 }
 0x579   : > { %2333 = vmatpush.bf16.msra.mxu2 %v2782_v17 }
 0x57d   : > { %2334 = vmatpush.bf16.msra.mxu2 %v2781_v22 }
 0x581   : > { %2335 = vmatpush.bf16.msra.mxu2 %v2780_v52 }
 0x5ed   : > { %v2034_v8 = vpop.f32.mrf.mxu1 }
 0x5ee   : > { %v2035_v21 = vadd.f32 %v2034_v8, %v1941_v45 }
 0x5f0   : > { %v2051_v48 = vmul.f32 %v2035_v21, %v2035_v21 }
 0x5f2   : > { %v2053_v12 = vmul.f32 %v2051_v48, %v2035_v21 }
 0x5f3   : > { %v2047_v30 = vpop.f32.mrf.mxu2 }
 0x5f4   : > { %v2055_v49 = vmul.f32 0.044715, %v2053_v12  ;;  %v2048_v50 = vadd.f32 %v2047_v30, %v1942_v36  ;;  %v2342_v12 = vld [vmem:[%s3605_s18] sm:$0x1] }
 0x5f5   : > { %v2036_v16 = vpop.f32.mrf.mxu1 }
 0x5f6   : > { %v2057_v35 = vadd.f32 %v2055_v49, %v2035_v21  ;;  %v2052_v51 = vmul.f32 %v2048_v50, %v2048_v50 }
 0x5f8   : > { %v2059_v40 = vmul.f32 0.7978846, %v2057_v35  ;;  %v2054_v53 = vmul.f32 %v2052_v51, %v2048_v50  ;;  %v2348_v35 = vld [vmem:[#allocation2] sm:$0x1] }
 0x5fa   : > { %2859 = vtanh.f32 %v2059_v40  ;;  %v2056_v54 = vmul.f32 0.044715, %v2054_v53 }
 0x5fb   : > { %v2049_v55 = vpop.f32.mrf.mxu2 }
 0x5fc   : > { %v2058_v56 = vadd.f32 %v2056_v54, %v2048_v50 }
 0x5fe   : > { %v2060_v20 = vmul.f32 0.7978846, %v2058_v56 }
 0x600   : > { %v2860_v19 = vpop.eup %2859  ;;  %2861 = vtanh.f32 %v2060_v20 }
 0x601   : > { %v2063_v57 = vadd.f32 1.0, %v2860_v19 }
 0x603   : > { %v2065_v27 = vmul.f32 0.5, %v2063_v57 }
 0x605   : > { %v2067_v58 = vmul.f32 %v2065_v27, %v2035_v21  ;;  %v2279_v21 = vld [vmem:[%s3604_s17] sm:$0x1] }
 0x606   : > { %v2862_v60 = vpop.eup %2861 }
 0x607   : > { %v2069_v37 = vpack.c.bf16 %v2067_v58, %v2067_v58  ;;  %v2064_v47 = vadd.f32 1.0, %v2862_v60 }
 0x609   : > { %2211 = vmatmul.bf16.vlgmr.msrb.gmra.mxu3 %v2069_v37  ;;  %v2066_v59 = vmul.f32 0.5, %v2064_v47 }
 0x60b   : > { %v2068_v25 = vmul.f32 %v2066_v59, %v2048_v50 }
 0x60d   : > { %v2070_v13 = vpack.c.bf16 %v2068_v25, %v2068_v25 }
 0x60f   : > { %2224 = vmatmul.bf16.vlgmr.msra.gmra.mxu1 %v2070_v13 }
 0x68c   : > { %v2212_v63 = vpop.f32.mrf.mxu3  ;;  %v2225_v0 = vpop.f32.mrf.mxu1 }
 0x68d   : > { %v2213_v2 = vadd.f32 %v2836_v32, %v2212_v63 }
 0x68f   : > { %v2226_v34 = vadd.f32 %v2225_v0, %v2213_v2 }
 0x691   : > { %v2229_v3 = vadd.f32 %v2226_v34, %v3488_v33 }
 0x693   : > { %2230 = vadd.xlane.f32.xlu1 %v2229_v3  ;;  %v2232_v1 = vmul.f32 %v2229_v3, %v2229_v3 }
 0x694   : > { %v2214_v4 = vpop.f32.mrf.mxu3  ;;  %v2227_v6 = vpop.f32.mrf.mxu1 }
 0x695   : > { %2233 = vadd.xlane.f32.xlu2 %v2232_v1 }
 0x706   : > { %v2231_v26 = vpop.xlane.xlu1 %2230 }
 0x707   : > { %v2235_v33 = vmul.f32 0.0078125, %v2231_v26 }
 0x708   : > { %v2234_v62 = vpop.xlane.xlu2 %2233 }
 0x709   : > { %v2237_v15 = vmul.f32 %v2235_v33, %v2235_v33  ;;  %v2236_v10 = vmul.f32 0.0078125, %v2234_v62  ;;  %v2239_v23 = vsub.f32 %v2229_v3, %v2235_v33 }
 0x70b   : > { %v2238_v28 = vsub.f32 %v2236_v10, %v2237_v15 }
 0x70d   : > { %v2240_v31 = vadd.f32 1e-12, %v2238_v28 }
 0x70f   : > { %2863 = vrsqrt.f32 %v2240_v31  ;;  %vm2247_vm9 = vweird.f32 %v2240_v31 }
 0x715   : > { %v2864_v29 = vpop.eup %2863 }
 0x716   : > { %v2242_v39 = vmul.f32 %v2864_v29, %v2240_v31  ;;  %vm2248_vm8 = vweird.f32 %v2864_v29 }
 0x717   : > { %vm2249_vm10 = vmor %vm2247_vm9, %vm2248_vm8 }
 0x718   : > { %v2243_v24 = vmul.f32 %v2864_v29, %v2242_v39 }
 0x71a   : > { %v2244_v14 = vmul.f32 0.5, %v2243_v24 }
 0x71c   : > { %v2245_v46 = vsub.f32 1.5, %v2244_v14 }
 0x71e   : > { %v2246_v18 = vmul.f32 %v2864_v29, %v2245_v46 }
 0x720   : > { %v2250_v42 = vsel %vm2249_vm10, %v2864_v29, %v2246_v18 }
 0x721   : > { %v2251_v43 = vmul.f32 %v2250_v42, %v2239_v23 }
 0x723   : > { %v2256_v44 = vmul.f32 %v2837_v41, %v2251_v43 }
 0x725   : > { %v2261_v45 = vadd.f32 %v2838_v7, %v2256_v44 }
 0x727   : > { %v2262_v8 = vpack.c.bf16 %v2261_v45, %v2261_v45 }
 0x729   : > { %2336 = vmatmul.bf16.vlgmr.msra.gmra.mxu2 %v2262_v8 }
 0x7ac   : > { %v2337_v48 = vpop.f32.mrf.mxu2 }
 0x7ad   : > { %v2338_v36 = vadd.f32 %v2337_v48, %v2279_v21 }
 0x7af   : > { %2865 = vtanh.f32 %v2338_v36 }
 0x7b4   : > { %v2339_v30 = vpop.f32.mrf.mxu2 }
 0x7b5   : > { %v2866_v49 = vpop.eup %2865 }
 0x7b6   : > { %v2343_v50 = vmul.f32 %v2866_v49, %v2342_v12 }
 0x7b8   : > { %v2345_v16 = vsel %vm2344_vm11, %v2343_v50, 0.0 }
 0x7b9   : > { %2346 = vadd.xlane.f32.xlu0 %v2345_v16 }
 0x82c   : > { %v2347_v51 = vpop.xlane.xlu0 %2346 }
 0x82d   : > { %v2349_v40 = vadd.f32 %v2348_v35, %v2347_v51 }
 0x82f   : > { %2351 = vst.msk [vmem:[%s638_s27] sm:$0x1] %vm2350_vm12, %v2349_v40 }
 0x830 PF: > { %s32_s23 = sadd.s32 1, %s2873_s23  }
 0x831   : > { %p29_p4 = scmp.ge.s32.totalorder %s32_s23, 4  }
 0x833   :  { %31 = sbr.rel (!%p29_p4) target bundleno = 6 (0x6), region = 133 }

</bundles_post_ra>
